<compile_context>
chip_gen: v7x
topology: tpu7x:2x2x1
jax: 0.10.0
libtpu: 0.0.40
codegen_flags: <defaults>
</compile_context>

<pallas_src>
import jax
import jax.numpy as jnp
from jax import lax
from jax.experimental import pallas as pl
from jax.experimental.pallas import tpu as pltpu

EPS = 1e-5


def _make_conv_kernel(H, W, cin, compute_dtype, normalize_input):
    """3x3 stride-1 pad-1 conv (+ optional BN-affine+ReLU on the input) for one image.

    The image arrives as a flattened (H*W, cin) slab.  It is staged into a flat
    f32 VMEM scratch with W+1 zero rows above and below; tap (dy, dx) is then
    just the offset load xpad[(W+1) + dy*W + dx : ... + H*W] (row out-of-image
    taps land in the zero halo, column out-of-image taps are masked with a
    per-position column mask).  The 9 taps are concatenated along the lane
    axis (im2col) and fed to one MXU matmul with f32 accumulation.
    """
    HW = H * W
    PAD = W + 1  # halo rows on each side of the flattened (h*W + w) axis

    def kernel(*refs):
        if normalize_input:
            x_ref, w_ref, scale_ref, shift_ref, y_ref, stats_ref, xpad_ref = refs
        else:
            x_ref, w_ref, y_ref, stats_ref, xpad_ref = refs
            scale_ref = shift_ref = None

        # ---- stage the (optionally BN+ReLU'd) activation into the scratch ----
        x = x_ref[0].astype(jnp.float32)                       # (HW, cin)
        if normalize_input:
            x = x * scale_ref[...] + shift_ref[...]            # BN1 affine, f32
            x = jnp.maximum(x, 0.0)                            # ReLU
        # zero only the halo rows (re-done every grid step -> no stale VMEM)
        halo = jnp.zeros((PAD, cin), jnp.float32)
        xpad_ref[pl.ds(0, PAD), :] = halo
        xpad_ref[pl.ds(PAD + HW, PAD), :] = halo
        xpad_ref[pl.ds(PAD, HW), :] = x

        # column-validity masks for the dx = -1 / +1 taps (wrap columns read
        # valid-but-wrong neighbour-row data, so they must be masked to zero)
        col = lax.broadcasted_iota(jnp.int32, (HW, cin), 0) % W
        left_ok = col > 0          # w-1 exists
        right_ok = col < W - 1     # w+1 exists

        # ---- im2col: 9 offset loads -> (HW, 9*cin); one MXU matmul, f32 acc ----
        taps = []
        for dy in (-1, 0, 1):
            for dx in (-1, 0, 1):
                t = xpad_ref[pl.ds(PAD + dy * W + dx, HW), :]
                if dx == -1:
                    t = jnp.where(left_ok, t, 0.0)
                elif dx == 1:
                    t = jnp.where(right_ok, t, 0.0)
                taps.append(t)
        patches = jnp.concatenate(taps, axis=-1)               # (HW, 9*cin) f32
        acc = jnp.dot(patches.astype(compute_dtype), w_ref[...],
                      preferred_element_type=jnp.float32)      # (HW, cout) f32

        # raw conv output + per-image partial BN statistics (f32)
        y_ref[0] = acc.astype(y_ref.dtype)
        s = jnp.sum(acc, axis=0, keepdims=True)
        ss = jnp.sum(acc * acc, axis=0, keepdims=True)
        stats_ref[0] = jnp.concatenate([s, ss], axis=0)        # (2, cout)

    return kernel


def _bn_relu_kernel(y_ref, scale_ref, shift_ref, o_ref):
    """Lane-dense BN affine + ReLU on a (rows, W*C) slab (unmasked stores)."""
    y = y_ref[...].astype(jnp.float32)
    o_ref[...] = jnp.maximum(y * scale_ref[...] + shift_ref[...],
                             0.0).astype(o_ref.dtype)


def _bn_scale_shift(stats, count, gamma, beta):
    """Fold accumulated batch statistics into per-channel scale/shift (f32)."""
    s = jnp.sum(stats[:, 0, :], axis=0)
    ss = jnp.sum(stats[:, 1, :], axis=0)
    mean = s / count
    var = jnp.maximum(ss / count - mean * mean, 0.0)   # biased variance (train mode)
    scale = gamma.astype(jnp.float32) * lax.rsqrt(var + EPS)
    shift = beta.astype(jnp.float32) - mean * scale
    return scale.reshape(1, -1), shift.reshape(1, -1)


def double_conv(x_nchw, w1_oihw, g1, b1, w2_oihw, g2, b2,
                *, compute_dtype=jnp.bfloat16):
    """Pallas DoubleConv, training-mode BN. (N,Cin,H,W) f32 -> (N,Cout,H,W) f32."""
    N, Cin, H, W = x_nchw.shape
    Cout = w1_oihw.shape[0]
    HW = H * W
    count = float(N * HW)

    # Layout plumbing only: NCHW -> channels-last (N, H*W, C); OIHW -> (9*Cin, Cout)
    # with row index ((ky*3 + kx)*Cin + ci), matching the kernel's tap order.
    x = jnp.transpose(x_nchw, (0, 2, 3, 1)).reshape(N, HW, Cin).astype(compute_dtype)
    w1 = jnp.transpose(w1_oihw, (2, 3, 1, 0)).reshape(9 * Cin, Cout).astype(compute_dtype)
    w2 = jnp.transpose(w2_oihw, (2, 3, 1, 0)).reshape(9 * Cout, Cout).astype(compute_dtype)

    params = pltpu.CompilerParams(dimension_semantics=("parallel",))

    def conv_call(cin, normalize_input):
        in_specs = [pl.BlockSpec((1, HW, cin), lambda n: (n, 0, 0)),
                    pl.BlockSpec((9 * cin, Cout), lambda n: (0, 0))]
        if normalize_input:
            in_specs += [pl.BlockSpec((1, Cout), lambda n: (0, 0)),
                         pl.BlockSpec((1, Cout), lambda n: (0, 0))]
        return pl.pallas_call(
            _make_conv_kernel(H, W, cin, compute_dtype, normalize_input),
            grid=(N,),
            in_specs=in_specs,
            out_specs=[pl.BlockSpec((1, HW, Cout), lambda n: (n, 0, 0)),
                       pl.BlockSpec((1, 2, Cout), lambda n: (n, 0, 0))],
            out_shape=[jax.ShapeDtypeStruct((N, HW, Cout), compute_dtype),
                       jax.ShapeDtypeStruct((N, 2, Cout), jnp.float32)],
            # f32 staging scratch: safe arbitrary-offset tap loads + f32 BN affine.
            scratch_shapes=[pltpu.VMEM((HW + 2 * (W + 1), cin), jnp.float32)],
            compiler_params=params,
        )

    # ---- pass 1: conv1 + partial BN1 stats ---------------------------------
    y1, stats1 = conv_call(Cin, normalize_input=False)(x, w1)
    scale1, shift1 = _bn_scale_shift(stats1, count, g1, b1)

    # ---- pass 2: BN1 + ReLU + conv2 + partial BN2 stats --------------------
    y2, stats2 = conv_call(Cout, normalize_input=True)(y1, w2, scale1, shift1)
    scale2, shift2 = _bn_scale_shift(stats2, count, g2, b2)

    # ---- pass 3: BN2 + ReLU on a lane-dense (N*H, W*Cout) slab -------------
    y2_wide = y2.reshape(N * H, W * Cout)                      # free reshape (row-major)
    scale2w = jnp.tile(scale2.reshape(-1), W).reshape(1, W * Cout)
    shift2w = jnp.tile(shift2.reshape(-1), W).reshape(1, W * Cout)
    out_wide = pl.pallas_call(
        _bn_relu_kernel,
        grid=(N,),
        in_specs=[pl.BlockSpec((H, W * Cout), lambda n: (n, 0)),
                  pl.BlockSpec((1, W * Cout), lambda n: (0, 0)),
                  pl.BlockSpec((1, W * Cout), lambda n: (0, 0))],
        out_specs=pl.BlockSpec((H, W * Cout), lambda n: (n, 0)),
        out_shape=jax.ShapeDtypeStruct((N * H, W * Cout), jnp.float32),
        compiler_params=params,
    )(y2_wide, scale2w, shift2w)

    out_nhwc = out_wide.reshape(N, H, W, Cout)
    return jnp.transpose(out_nhwc, (0, 3, 1, 2))               # back to NCHW


def double_conv_reference(x, w1_oihw, g1, b1, w2_oihw, g2, b2):
    """Plain-JAX reference matching PyTorch training-mode forward."""
    def conv(y, w):
        return lax.conv_general_dilated(
            y, w, window_strides=(1, 1), padding=((1, 1), (1, 1)),
            dimension_numbers=('NCHW', 'OIHW', 'NCHW'))

    def bn_relu(y, g, b):
        mean = jnp.mean(y, axis=(0, 2, 3), keepdims=True)
        var = jnp.mean((y - mean) ** 2, axis=(0, 2, 3), keepdims=True)
        yn = (y - mean) / jnp.sqrt(var + EPS)
        yn = yn * g.reshape(1, -1, 1, 1) + b.reshape(1, -1, 1, 1)
        return jnp.maximum(yn, 0.0)

    h = bn_relu(conv(x, w1_oihw), g1, b1)
    return bn_relu(conv(h, w2_oihw), g2, b2)


if __name__ == "__main__":
    key = jax.random.PRNGKey(0)
    k_x, k_w1, k_w2 = jax.random.split(key, 3)

    N, Cin, Cout, H, W = 2, 4, 8, 16, 16
    x = jax.random.normal(k_x, (N, Cin, H, W), jnp.float32)

    # Deterministic parameter init (shapes per nn.Conv2d / nn.BatchNorm2d).
    w1 = jax.random.normal(k_w1, (Cout, Cin, 3, 3), jnp.float32) * 0.1
    w2 = jax.random.normal(k_w2, (Cout, Cout, 3, 3), jnp.float32) * 0.1
    g1 = jnp.ones((Cout,), jnp.float32)   # BN weight init = 1
    b1 = jnp.zeros((Cout,), jnp.float32)  # BN bias init = 0
    g2 = jnp.ones((Cout,), jnp.float32)
    b2 = jnp.zeros((Cout,), jnp.float32)

    ref = jax.block_until_ready(double_conv_reference(x, w1, g1, b1, w2, g2, b2))

    # Exact-algorithm check: full-f32 compute path, tight tolerance.
    out_f32 = jax.block_until_ready(
        double_conv(x, w1, g1, b1, w2, g2, b2, compute_dtype=jnp.float32))
    assert out_f32.shape == (N, Cout, H, W)
    assert jnp.allclose(out_f32, ref, rtol=1e-3, atol=1e-3), \
        float(jnp.max(jnp.abs(out_f32 - ref)))

    # Default performance path: bf16 MXU operands, f32 accumulation / BN stats.
    out_bf16 = jax.block_until_ready(double_conv(x, w1, g1, b1, w2, g2, b2))
    assert out_bf16.shape == (N, Cout, H, W)
    assert jnp.allclose(out_bf16, ref, rtol=5e-2, atol=5e-2), \
        float(jnp.max(jnp.abs(out_bf16 - ref)))

    print("KERNEL_OK")
</pallas_src>

<mosaic_0001>
module attributes {stable_mosaic.version = 11 : i64} {
  func.func @kernel(%arg0: i32, %arg1: memref<1x256x4xf32, #tpu.memory_space<vmem>>, %arg2: memref<36x8xf32, #tpu.memory_space<vmem>>, %arg3: memref<1x256x8xf32, #tpu.memory_space<vmem>>, %arg4: memref<1x2x8xf32, #tpu.memory_space<vmem>>, %arg5: memref<290x4xf32, #tpu.memory_space<vmem>>) attributes {dimension_semantics = [#tpu.dimension_semantics<parallel>], iteration_bounds = array<i64: 2>, scalar_prefetch = 0 : i64, scratch_operands = 1 : i64, tpu.core_type = #tpu.core_type<tc>, window_params = [{transform_indices = @transform_0, window_bounds = array<i64: 1, 256, 4>}, {pipeline_mode = #tpu.pipeline_mode<synchronous>, transform_indices = @transform_1, window_bounds = array<i64: 36, 8>}, {transform_indices = @transform_2, window_bounds = array<i64: 1, 256, 8>}, {transform_indices = @transform_3, window_bounds = array<i64: 1, 2, 8>}]} {
    %c0 = arith.constant 0 : index
    %c0_0 = arith.constant 0 : index
    %c0_1 = arith.constant 0 : index
    %0 = vector.load %arg1[%c0, %c0_0, %c0_1] : memref<1x256x4xf32, #tpu.memory_space<vmem>>, vector<1x256x4xf32>
    %1 = vector.shape_cast %0 : vector<1x256x4xf32> to vector<256x4xf32>
    %cst = arith.constant 0.000000e+00 : f32
    %2 = vector.broadcast %cst : f32 to vector<17x4xf32>
    %c0_2 = arith.constant 0 : index
    %c0_3 = arith.constant 0 : index
    %3 = vector.load %arg5[%c0_2, %c0_3] : memref<290x4xf32, #tpu.memory_space<vmem>>, vector<17x4xf32>
    tpu.vector_store %arg5[%c0_2, %c0_3], %2 {strides = array<i32>} : memref<290x4xf32, #tpu.memory_space<vmem>>, vector<17x4xf32>,
    %c273 = arith.constant 273 : index
    %c0_4 = arith.constant 0 : index
    %4 = vector.load %arg5[%c273, %c0_4] : memref<290x4xf32, #tpu.memory_space<vmem>>, vector<17x4xf32>
    tpu.vector_store %arg5[%c273, %c0_4], %2 {strides = array<i32>} : memref<290x4xf32, #tpu.memory_space<vmem>>, vector<17x4xf32>,
    %c17 = arith.constant 17 : index
    %c0_5 = arith.constant 0 : index
    %5 = vector.load %arg5[%c17, %c0_5] : memref<290x4xf32, #tpu.memory_space<vmem>>, vector<256x4xf32>
    tpu.vector_store %arg5[%c17, %c0_5], %1 {strides = array<i32>} : memref<290x4xf32, #tpu.memory_space<vmem>>, vector<256x4xf32>,
    %6 = tpu.iota {dimensions = array<i32: 0>} : vector<256x4xi32>
    %c16_i32 = arith.constant 16 : i32
    %c0_i32 = arith.constant 0 : i32
    %7 = arith.cmpi eq, %c16_i32, %c0_i32 : i32
    %c1_i32 = arith.constant 1 : i32
    %8 = arith.select %7, %c1_i32, %c16_i32 : i32
    %9 = vector.broadcast %8 : i32 to vector<256x4xi32>
    %10 = arith.remsi %6, %9 : vector<256x4xi32>
    %c0_i32_6 = arith.constant 0 : i32
    %11 = vector.broadcast %c0_i32_6 : i32 to vector<256x4xi32>
    %12 = arith.cmpi ne, %10, %11 : vector<256x4xi32>
    %c0_i32_7 = arith.constant 0 : i32
    %13 = vector.broadcast %c0_i32_7 : i32 to vector<256x4xi32>
    %14 = arith.cmpi slt, %10, %13 : vector<256x4xi32>
    %c0_i32_8 = arith.constant 0 : i32
    %15 = arith.cmpi slt, %8, %c0_i32_8 : i32
    %16 = vector.broadcast %15 : i1 to vector<256x4xi1>
    %17 = vector.broadcast %16 : vector<256x4xi1> to vector<256x4xi1>
    %18 = arith.xori %14, %17 : vector<256x4xi1>
    %19 = arith.andi %18, %12 : vector<256x4xi1>
    %20 = vector.broadcast %8 : i32 to vector<256x4xi32>
    %21 = arith.addi %10, %20 : vector<256x4xi32>
    %22 = arith.select %19, %21, %10 : vector<256x4xi1>, vector<256x4xi32>
    %c0_i32_9 = arith.constant 0 : i32
    %23 = vector.broadcast %c0_i32_9 : i32 to vector<256x4xi32>
    %24 = arith.cmpi sgt, %22, %23 : vector<256x4xi32>
    %c15_i32 = arith.constant 15 : i32
    %25 = vector.broadcast %c15_i32 : i32 to vector<256x4xi32>
    %26 = arith.cmpi slt, %22, %25 : vector<256x4xi32>
    %c0_10 = arith.constant 0 : index
    %c0_11 = arith.constant 0 : index
    %27 = vector.load %arg5[%c0_10, %c0_11] : memref<290x4xf32, #tpu.memory_space<vmem>>, vector<256x4xf32>
    %cst_12 = arith.constant 0.000000e+00 : f32
    %28 = vector.broadcast %cst_12 : f32 to vector<256x4xf32>
    %29 = arith.select %24, %27, %28 : vector<256x4xi1>, vector<256x4xf32>
    %c1 = arith.constant 1 : index
    %c0_13 = arith.constant 0 : index
    %30 = vector.load %arg5[%c1, %c0_13] : memref<290x4xf32, #tpu.memory_space<vmem>>, vector<256x4xf32>
    %c2 = arith.constant 2 : index
    %c0_14 = arith.constant 0 : index
    %31 = vector.load %arg5[%c2, %c0_14] : memref<290x4xf32, #tpu.memory_space<vmem>>, vector<256x4xf32>
    %cst_15 = arith.constant 0.000000e+00 : f32
    %32 = vector.broadcast %cst_15 : f32 to vector<256x4xf32>
    %33 = arith.select %26, %31, %32 : vector<256x4xi1>, vector<256x4xf32>
    %c16 = arith.constant 16 : index
    %c0_16 = arith.constant 0 : index
    %34 = vector.load %arg5[%c16, %c0_16] : memref<290x4xf32, #tpu.memory_space<vmem>>, vector<256x4xf32>
    %cst_17 = arith.constant 0.000000e+00 : f32
    %35 = vector.broadcast %cst_17 : f32 to vector<256x4xf32>
    %36 = arith.select %24, %34, %35 : vector<256x4xi1>, vector<256x4xf32>
    %c17_18 = arith.constant 17 : index
    %c0_19 = arith.constant 0 : index
    %37 = vector.load %arg5[%c17_18, %c0_19] : memref<290x4xf32, #tpu.memory_space<vmem>>, vector<256x4xf32>
    %c18 = arith.constant 18 : index
    %c0_20 = arith.constant 0 : index
    %38 = vector.load %arg5[%c18, %c0_20] : memref<290x4xf32, #tpu.memory_space<vmem>>, vector<256x4xf32>
    %cst_21 = arith.constant 0.000000e+00 : f32
    %39 = vector.broadcast %cst_21 : f32 to vector<256x4xf32>
    %40 = arith.select %26, %38, %39 : vector<256x4xi1>, vector<256x4xf32>
    %c32 = arith.constant 32 : index
    %c0_22 = arith.constant 0 : index
    %41 = vector.load %arg5[%c32, %c0_22] : memref<290x4xf32, #tpu.memory_space<vmem>>, vector<256x4xf32>
    %cst_23 = arith.constant 0.000000e+00 : f32
    %42 = vector.broadcast %cst_23 : f32 to vector<256x4xf32>
    %43 = arith.select %24, %41, %42 : vector<256x4xi1>, vector<256x4xf32>
    %c33 = arith.constant 33 : index
    %c0_24 = arith.constant 0 : index
    %44 = vector.load %arg5[%c33, %c0_24] : memref<290x4xf32, #tpu.memory_space<vmem>>, vector<256x4xf32>
    %c34 = arith.constant 34 : index
    %c0_25 = arith.constant 0 : index
    %45 = vector.load %arg5[%c34, %c0_25] : memref<290x4xf32, #tpu.memory_space<vmem>>, vector<256x4xf32>
    %cst_26 = arith.constant 0.000000e+00 : f32
    %46 = vector.broadcast %cst_26 : f32 to vector<256x4xf32>
    %47 = arith.select %26, %45, %46 : vector<256x4xi1>, vector<256x4xf32>
    %48 = tpu.concatenate %29, %30, %33, %36, %37, %40, %43, %44, %47 in 1 : vector<256x4xf32>, vector<256x4xf32>, vector<256x4xf32>, vector<256x4xf32>, vector<256x4xf32>, vector<256x4xf32>, vector<256x4xf32>, vector<256x4xf32>, vector<256x4xf32> -> vector<256x36xf32>
    %c0_27 = arith.constant 0 : index
    %c0_28 = arith.constant 0 : index
    %49 = vector.load %arg2[%c0_27, %c0_28] : memref<36x8xf32, #tpu.memory_space<vmem>>, vector<36x8xf32>
    %cst_29 = arith.constant dense<0.000000e+00> : vector<256x8xf32>
    %50 = tpu.matmul %48, %49, %cst_29 {dimension_numbers = #tpu.dot_dimension_numbers<[1], [0], [0], [1], [0, 0, 1, 1], [], []>} : vector<256x36xf32>, vector<36x8xf32>, vector<256x8xf32> -> vector<256x8xf32>
    %c0_30 = arith.constant 0 : index
    %c0_31 = arith.constant 0 : index
    %c0_32 = arith.constant 0 : index
    %51 = vector.load %arg3[%c0_30, %c0_31, %c0_32] : memref<1x256x8xf32, #tpu.memory_space<vmem>>, vector<1x256x8xf32>
    %52 = vector.shape_cast %51 : vector<1x256x8xf32> to vector<256x8xf32>
    %53 = vector.shape_cast %50 : vector<256x8xf32> to vector<1x256x8xf32>
    tpu.vector_store %arg3[%c0_30, %c0_31, %c0_32], %53 {strides = array<i32>} : memref<1x256x8xf32, #tpu.memory_space<vmem>>, vector<1x256x8xf32>,
    %cst_33 = arith.constant dense<0.000000e+00> : vector<8xf32>
    %54 = vector.multi_reduction <add>, %50, %cst_33 [0] : vector<256x8xf32> to vector<8xf32>
    %55 = vector.shape_cast %54 : vector<8xf32> to vector<1x8xf32>
    %56 = arith.mulf %50, %50 : vector<256x8xf32>
    %cst_34 = arith.constant dense<0.000000e+00> : vector<8xf32>
    %57 = vector.multi_reduction <add>, %56, %cst_34 [0] : vector<256x8xf32> to vector<8xf32>
    %58 = vector.shape_cast %57 : vector<8xf32> to vector<1x8xf32>
    %59 = tpu.concatenate %55, %58 in 0 : vector<1x8xf32>, vector<1x8xf32> -> vector<2x8xf32>
    %c0_35 = arith.constant 0 : index
    %c0_36 = arith.constant 0 : index
    %c0_37 = arith.constant 0 : index
    %60 = vector.load %arg4[%c0_35, %c0_36, %c0_37] : memref<1x2x8xf32, #tpu.memory_space<vmem>>, vector<1x2x8xf32>
    %61 = vector.shape_cast %60 : vector<1x2x8xf32> to vector<2x8xf32>
    %62 = vector.shape_cast %59 : vector<2x8xf32> to vector<1x2x8xf32>
    tpu.vector_store %arg4[%c0_35, %c0_36, %c0_37], %62 {strides = array<i32>} : memref<1x2x8xf32, #tpu.memory_space<vmem>>, vector<1x2x8xf32>,
    return
  }
  func.func @transform_0(%arg0: i32) -> (i32, i32, i32) {
    %c0_i32 = arith.constant 0 : i32
    %c0_i32_0 = arith.constant 0 : i32
    %c0_i32_1 = arith.constant 0 : i32
    return %arg0, %c0_i32, %c0_i32_0 : i32, i32, i32
  }
  func.func @transform_1(%arg0: i32) -> (i32, i32) {
    %c0_i32 = arith.constant 0 : i32
    %c0_i32_0 = arith.constant 0 : i32
    %c0_i32_1 = arith.constant 0 : i32
    return %c0_i32, %c0_i32_0 : i32, i32
  }
  func.func @transform_2(%arg0: i32) -> (i32, i32, i32) {
    %c0_i32 = arith.constant 0 : i32
    %c0_i32_0 = arith.constant 0 : i32
    %c0_i32_1 = arith.constant 0 : i32
    return %arg0, %c0_i32, %c0_i32_0 : i32, i32, i32
  }
  func.func @transform_3(%arg0: i32) -> (i32, i32, i32) {
    %c0_i32 = arith.constant 0 : i32
    %c0_i32_0 = arith.constant 0 : i32
    %c0_i32_1 = arith.constant 0 : i32
    return %arg0, %c0_i32, %c0_i32_0 : i32, i32, i32
  }
}

</mosaic_0001>

<bundles_post_ra>
// kernel: tpu_custom_call.1
= control target key start
LH: loop header
LB: loop body
LE: loop exit
PB: predicated region body
PF: predicated region fallthrough
CT: control target
= control target key end

     0   :  { %9 = vsyncpa [#allocation4], 0  ;;  %s5092_s0 = inlined_call_operand.vmem [shape: f32[2,256,4], index: 0, kind: input, shape index: {}]   ;;  %s5093_s1 = inlined_call_operand.vmem [shape: f32[36,8], index: 1, kind: input, shape index: {}]   ;;  %s5094_s2 = inlined_call_operand.vmem [shape: f32[2,256,8], index: 2, kind: output, shape index: {0}]   ;;  %s5095_s3 = inlined_call_operand.hbm [shape: f32[2,2,8], index: 3, kind: output, shape index: {1}]  }
   0x1   :  { %11 = vsyncpa [#allocation4 + $0x1], 0  ;;  %s3226_s12 = smov 0   ;;  %s3228_s13 = smov 0  }
   0x2   :  { %s3230_s14 = smov 0   ;;  %s3232_s15 = smov 0  }
   0x3 LB: > { %s3247_s16 = sadd.s32 4294967295, %s3194_s15   ;;  %s2905_s17 = sadd.s32 4294967294, %s3194_s15   ;;  %s3194_s15 = sphi %s3232_s15, %s5517_s15   ;;  %s3190_s14 = sphi %s3230_s14, %s5516_s14   ;;  %s3186_s13 = sphi %s3228_s13, %s5515_s13   ;;  %s3182_s12 = sphi %s3226_s12, %s5514_s12  }
   0x4   : > { %s3251_s18 = sadd.s32 1, %s3194_s15   ;;  %s97_s19 = sadd.s32 1, %s3190_s14 }
   0x5   : > { %s94_s20 = ssub.s32 %s3194_s15, %s3251_s18  ;;  %p107_p0 = scmp.ne.s32.totalorder %s3190_s14, %s3186_s13 }
   0x6   : > { %p95_p1 = scmp.eq.s32.totalorder %s94_s20, 0  ;;  %p108_p2 = scmp.eq.s32.totalorder %s3247_s16, 1 }
   0x7   : > { %p113_p3 = scmp.ne.s32.totalorder %s3186_s13, %s3182_s12  ;;  %p114_p4 = scmp.eq.s32.totalorder %s2905_s17, 1 }
   0x8   : > { %s3262_s21 = scalar_select %p95_p1, %s3190_s14, %s97_s19  }
   0x9   : > { %p3264_p5 = por %p108_p2, %p107_p0  ;;  %p3268_p6 = por %p114_p4, %p113_p3 }
   0xa   : > { %p2908_p7 = scmp.ge.s32.totalorder %s3194_s15, 1  ;;  %p143_p8 = scmp.lt.s32.totalorder %s3194_s15, 3 }
   0xc   : > { %p144_p9 = pnand %p2908_p7, %p143_p8 }
   0xe   : > { %147 = sbr.rel (%p144_p9) target bundleno = 910 (0x38e), region = 28 }
  0x15   : > { %vm5106_vm0 = vcmask 31744   ;;  %vm217_vm1 = vcmask 24576   ;;  %p172_p10 = scmp.lt.s32.totalorder %s3247_s16, 1  ;;  %v3196_v0 = vmov 0.0   ;;  %s3197_s29 = smov 4   ;;  %v254_v32 = vlaneseq }
  0x16   : > { %215 = vst.msk [vmem:[#allocation2] sm:$0xff] %vm5106_vm0, %v3196_v0  ;;  %216 = vst.msk [vmem:[#allocation2 + $0x8] sm:$0xff] %vm5106_vm0, %v3196_v0  ;;  %s3198_s30 = smov 8   ;;  %s3199_s4 = smov 12  }
  0x17   : > { %219 = vst.msk [vmem:[#allocation2 + $0x111] sm:$0xff] %vm5106_vm0, %v3196_v0  ;;  %220 = vst.msk [vmem:[#allocation2 + $0x119] sm:$0xff] %vm5106_vm0, %v3196_v0  ;;  %s3280_s24 = scalar_select %p172_p10, %s3247_s16, 1  ;;  %v3375_v41 = vshrl.u32 %v254_v32, 7 }
  0x18   : > { %218 = vst.msk [vmem:[#allocation2 + $0x10] sm:$0x1] %vm217_vm1, %v3196_v0  ;;  %221 = vst.msk [vmem:[#allocation2 + $0x121] sm:$0x1] %vm217_vm1, %v3196_v0  ;;  %s3200_s5 = smov 16   ;;  %s3201_s10 = smov 20  }
  0x19   : > { %s2951_s25 = sshll.u32 %s3280_s24, 8  ;;  %v257_v43 = vadd.s32 16, %v3375_v41  ;;  %v259_v44 = vadd.s32 32, %v3375_v41  ;;  %v256_v52 = vadd.s32 8, %v3375_v41  ;;  %v278_v59 = vadd.s32 184, %v3375_v41  ;;  %s3202_s26 = smov 24  }
  0x1a   : > { %s3288_s28 = scalar_lea.vmem %s5092_s0, %s2951_s25  ;;  %s3204_s6 = smov 32   ;;  %v271_v51 = vadd.s32 128, %v3375_v41 }
  0x1b   : > { %v182_v1 = vld [vmem:[%s3288_s28] sm:$0xff]  ;;  %v184_v2 = vld [vmem:[%s3288_s28 + $0x10] sm:$0xff]  ;;  %v183_v3 = vld [vmem:[%s3288_s28 + $0x8] sm:$0xff]  ;;  %v305_v47 = vand.u32 15, %v257_v43  ;;  %v319_v48 = vand.u32 15, %v259_v44  ;;  %v298_v60 = vand.u32 15, %v256_v52 }
  0x1c   : > { %222 = vst.msk [vmem:[#allocation2 + $0x11] sm:$0xff] %vm5106_vm0, %v182_v1  ;;  %224 = vst.msk [vmem:[#allocation2 + $0x21] sm:$0xff] %vm5106_vm0, %v184_v2  ;;  %v186_v4 = vld [vmem:[%s3288_s28 + $0x20] sm:$0xff]  ;;  %v185_v5 = vld [vmem:[%s3288_s28 + $0x18] sm:$0xff]  ;;  %v264_v44 = vadd.s32 72, %v3375_v41  ;;  %s169_s24 = sand.u32 1, %s3186_s13  }
  0x1d   : > { %223 = vst.msk [vmem:[#allocation2 + $0x19] sm:$0xff] %vm5106_vm0, %v183_v3  ;;  %v188_v6 = vld [vmem:[%s3288_s28 + $0x30] sm:$0xff]  ;;  %v799_v7 = vld [vmem:[#allocation2 + $0x1] sm:$0xff]  ;;  %226 = vst.msk [vmem:[#allocation2 + $0x31] sm:$0xff] %vm5106_vm0, %v186_v4  ;;  %vm3400_vm2 = vcmp.gt.s32.totalorder %v305_v47, 0  ;;  %vm3407_vm3 = vcmp.gt.s32.totalorder %v319_v48, 0 }
  0x1e   : > { %225 = vst.msk [vmem:[#allocation2 + $0x29] sm:$0xff] %vm5106_vm0, %v185_v5  ;;  %228 = vst.msk [vmem:[#allocation2 + $0x41] sm:$0xff] %vm5106_vm0, %v188_v6  ;;  %v187_v9 = vld [vmem:[%s3288_s28 + $0x28] sm:$0xff]  ;;  %1067 = vrot.lane.b32.xlu0 %v799_v7, %s3197_s29  ;;  %v190_v10 = vld [vmem:[%s3288_s28 + $0x40] sm:$0xff]  ;;  %vm3439_vm4 = vcmp.lt.s32.totalorder %v298_v60, 15  ;;  %v258_v7 = vadd.s32 24, %v3375_v41 }
  0x1f   : > { %v800_v8 = vld [vmem:[#allocation2 + $0x9] sm:$0xff]  ;;  %227 = vst.msk [vmem:[#allocation2 + $0x39] sm:$0xff] %vm5106_vm0, %v187_v9  ;;  %v189_v11 = vld [vmem:[%s3288_s28 + $0x38] sm:$0xff]  ;;  %230 = vst.msk [vmem:[#allocation2 + $0x51] sm:$0xff] %vm5106_vm0, %v190_v10  ;;  %v280_v48 = vadd.s32 200, %v3375_v41  ;;  %v282_v3 = vadd.s32 216, %v3375_v41 }
  0x20   : > { %v192_v12 = vld [vmem:[%s3288_s28 + $0x50] sm:$0xff]  ;;  %229 = vst.msk [vmem:[#allocation2 + $0x49] sm:$0xff] %vm5106_vm0, %v189_v11  ;;  %v191_v13 = vld [vmem:[%s3288_s28 + $0x48] sm:$0xff]  ;;  %v194_v14 = vld [vmem:[%s3288_s28 + $0x60] sm:$0xff]  ;;  %v312_v10 = vand.u32 15, %v258_v7  ;;  %s2948_s7 = sshll.u32 %s3247_s16, 5 }
  0x21   : > { %232 = vst.msk [vmem:[#allocation2 + $0x61] sm:$0xff] %vm5106_vm0, %v192_v12  ;;  %v193_v15 = vld [vmem:[%s3288_s28 + $0x58] sm:$0xff]  ;;  %231 = vst.msk [vmem:[#allocation2 + $0x59] sm:$0xff] %vm5106_vm0, %v191_v13  ;;  %v196_v16 = vld [vmem:[%s3288_s28 + $0x70] sm:$0xff]  ;;  %s5050_s17 = scalar_lea.hbm %s5095_s3, %s2948_s7  ;;  %s2805_s19 = scalar_lea.sflag [#allocation4], %s169_s24 }
  0x22   : > { %234 = vst.msk [vmem:[#allocation2 + $0x71] sm:$0xff] %vm5106_vm0, %v194_v14  ;;  %233 = vst.msk [vmem:[#allocation2 + $0x69] sm:$0xff] %vm5106_vm0, %v193_v15  ;;  %v195_v17 = vld [vmem:[%s3288_s28 + $0x68] sm:$0xff]  ;;  %v198_v18 = vld [vmem:[%s3288_s28 + $0x80] sm:$0xff]  ;;  %1069 = vrot.lane.b32.xlu0 %v800_v8, %s3197_s29  ;;  %vm3464_vm5 = vcmp.lt.s32.totalorder %v312_v10, 15  ;;  %s3205_s20 = smov [#allocation3]  }
  0x23   : > { %236 = vst.msk [vmem:[#allocation2 + $0x81] sm:$0xff] %vm5106_vm0, %v196_v16  ;;  %235 = vst.msk [vmem:[#allocation2 + $0x79] sm:$0xff] %vm5106_vm0, %v195_v17  ;;  %v197_v19 = vld [vmem:[%s3288_s28 + $0x78] sm:$0xff]  ;;  %v200_v20 = vld [vmem:[%s3288_s28 + $0x90] sm:$0xff] }
  0x24   : > { %238 = vst.msk [vmem:[#allocation2 + $0x91] sm:$0xff] %vm5106_vm0, %v198_v18  ;;  %v199_v21 = vld [vmem:[%s3288_s28 + $0x88] sm:$0xff]  ;;  %237 = vst.msk [vmem:[#allocation2 + $0x89] sm:$0xff] %vm5106_vm0, %v197_v19  ;;  %v202_v22 = vld [vmem:[%s3288_s28 + $0xa0] sm:$0xff] }
  0x25   : > { %240 = vst.msk [vmem:[#allocation2 + $0xa1] sm:$0xff] %vm5106_vm0, %v200_v20  ;;  %239 = vst.msk [vmem:[#allocation2 + $0x99] sm:$0xff] %vm5106_vm0, %v199_v21  ;;  %v201_v23 = vld [vmem:[%s3288_s28 + $0x98] sm:$0xff]  ;;  %v204_v24 = vld [vmem:[%s3288_s28 + $0xb0] sm:$0xff] }
  0x26   : > { %v3333_v25 = vld [vmem:[#allocation2 + $0x11] sm:$0xff]  ;;  %v3335_v26 = vld [vmem:[#allocation2 + $0x21] sm:$0xff]  ;;  %242 = vst.msk [vmem:[#allocation2 + $0xb1] sm:$0xff] %vm5106_vm0, %v202_v22  ;;  %241 = vst.msk [vmem:[#allocation2 + $0xa9] sm:$0xff] %vm5106_vm0, %v201_v23 }
  0x27   : > { %244 = vst.msk [vmem:[#allocation2 + $0xc1] sm:$0xff] %vm5106_vm0, %v204_v24  ;;  %1071 = vrot.lane.b32.xlu1 %v3333_v25, %s3197_s29  ;;  %v3342_v27 = vld [vmem:[#allocation2 + $0x19] sm:$0xff]  ;;  %v203_v28 = vld [vmem:[%s3288_s28 + $0xa8] sm:$0xff]  ;;  %1075 = vrot.lane.b32.xlu0 %v3335_v26, %s3197_s29  ;;  %v3350_v30 = vld [vmem:[#allocation2 + $0x31] sm:$0xff] }
  0x28   : > { %v206_v29 = vld [vmem:[%s3288_s28 + $0xc0] sm:$0xff]  ;;  %243 = vst.msk [vmem:[#allocation2 + $0xb9] sm:$0xff] %vm5106_vm0, %v203_v28  ;;  %v3354_v31 = vld [vmem:[#allocation2 + $0x29] sm:$0xff]  ;;  %v205_v34 = vld [vmem:[%s3288_s28 + $0xb8] sm:$0xff]  ;;  %v260_v28 = vadd.s32 40, %v3375_v41 }
  0x29   : > { %246 = vst.msk [vmem:[#allocation2 + $0xd1] sm:$0xff] %vm5106_vm0, %v206_v29  ;;  %v3358_v33 = vld [vmem:[#allocation2 + $0x41] sm:$0xff]  ;;  %v208_v35 = vld [vmem:[%s3288_s28 + $0xd0] sm:$0xff]  ;;  %245 = vst.msk [vmem:[#allocation2 + $0xc9] sm:$0xff] %vm5106_vm0, %v205_v34 }
  0x2a   : > { %v207_v36 = vld [vmem:[%s3288_s28 + $0xc8] sm:$0xff]  ;;  %248 = vst.msk [vmem:[#allocation2 + $0xe1] sm:$0xff] %vm5106_vm0, %v208_v35  ;;  %v210_v37 = vld [vmem:[%s3288_s28 + $0xe0] sm:$0xff]  ;;  %v209_v38 = vld [vmem:[%s3288_s28 + $0xd8] sm:$0xff]  ;;  %v326_v34 = vand.u32 15, %v260_v28  ;;  %v262_v35 = vadd.s32 56, %v3375_v41 }
  0x2b   : > { %1073 = vrot.lane.b32.xlu1 %v3342_v27, %s3197_s29  ;;  %1079 = vrot.lane.b32.xlu0 %v3350_v30, %s3197_s29  ;;  %247 = vst.msk [vmem:[#allocation2 + $0xd9] sm:$0xff] %vm5106_vm0, %v207_v36  ;;  %v3370_v39 = vld [vmem:[#allocation2 + $0x39] sm:$0xff]  ;;  %250 = vst.msk [vmem:[#allocation2 + $0xf1] sm:$0xff] %vm5106_vm0, %v210_v37  ;;  %v211_v40 = vld [vmem:[%s3288_s28 + $0xe8] sm:$0xff] }
  0x2c   : > { %249 = vst.msk [vmem:[#allocation2 + $0xe9] sm:$0xff] %vm5106_vm0, %v209_v38  ;;  %251 = vst.msk [vmem:[#allocation2 + $0xf9] sm:$0xff] %vm5106_vm0, %v211_v40  ;;  %v3380_v42 = vld [vmem:[#allocation2 + $0x51] sm:$0xff]  ;;  %v3386_v45 = vld [vmem:[#allocation2 + $0x49] sm:$0xff]  ;;  %vm3500_vm6 = vcmp.lt.s32.totalorder %v326_v34, 15  ;;  %v340_v40 = vand.u32 15, %v262_v35 }
  0x2d   : > { %v3390_v46 = vld [vmem:[#allocation2 + $0x61] sm:$0xff]  ;;  %v3394_v49 = vld [vmem:[#allocation2 + $0x59] sm:$0xff]  ;;  %v3398_v50 = vld [vmem:[#allocation2 + $0x71] sm:$0xff] }
  0x2e   : > { %v3411_v54 = vld [vmem:[#allocation2 + $0x69] sm:$0xff]  ;;  %v3420_v57 = vld [vmem:[#allocation2 + $0x20] sm:$0xff]  ;;  %v3435_v63 = vld [vmem:[#allocation2 + $0x91] sm:$0xff]  ;;  %vm3518_vm7 = vcmp.lt.s32.totalorder %v340_v40, 15 }
  0x2f   : > { %1077 = vrot.lane.b32.xlu1 %v3354_v31, %s3197_s29  ;;  %1083 = vrot.lane.b32.xlu0 %v3358_v33, %s3197_s29  ;;  %v3413_v55 = vld [vmem:[#allocation2 + $0x10] sm:$0xff]  ;;  %v3422_v58 = vld [vmem:[#allocation2 + $0x81] sm:$0xff]  ;;  %v3430_v62 = vld [vmem:[#allocation2 + $0x79] sm:$0xff]  ;;  %5165 = vst [vmem:[#allocation7_spill] sm:$0xff] %v3435_v63 }
  0x30   : > { %5164 = vst [vmem:[#allocation6_spill] sm:$0xff] %v3413_v55  ;;  %v212_v61 = vld [vmem:[%s3288_s28 + $0xf0] sm:$0xff]  ;;  %v3443_v1 = vld [vmem:[#allocation2 + $0x1a] sm:$0xff]  ;;  %v831_v22 = vld [vmem:[#allocation2 + $0x2] sm:$0xff] }
  0x31   : > { %252 = vst.msk [vmem:[#allocation2 + $0x101] sm:$0xff] %vm5106_vm0, %v212_v61  ;;  %v3445_v2 = vld [vmem:[#allocation2 + $0x89] sm:$0xff]  ;;  %v819_v4 = vld [vmem:[#allocation2 + $0xa1] sm:$0xff]  ;;  %v3454_v5 = vld [vmem:[#allocation2 + $0x99] sm:$0xff]  ;;  %v866_v37 = vsel %vm3464_vm5, %v3443_v1, 0.0  ;;  %v354_v61 = vand.u32 15, %v264_v44 }
  0x32   : > { %5168 = vst [vmem:[#allocation8_spill] sm:$0xff] %v3454_v5  ;;  %v821_v6 = vld [vmem:[#allocation2 + $0xb1] sm:$0xff]  ;;  %v820_v8 = vld [vmem:[#allocation2 + $0xa9] sm:$0xff]  ;;  %v823_v9 = vld [vmem:[#allocation2 + $0xc1] sm:$0xff] }
  0x33   : > { %1081 = vrot.lane.b32.xlu1 %v3370_v39, %s3197_s29  ;;  %1087 = vrot.lane.b32.xlu0 %v3380_v42, %s3197_s29  ;;  %v822_v11 = vld [vmem:[#allocation2 + $0xb9] sm:$0xff]  ;;  %v825_v12 = vld [vmem:[#allocation2 + $0xd1] sm:$0xff]  ;;  %v824_v15 = vld [vmem:[#allocation2 + $0xc9] sm:$0xff]  ;;  %vm3536_vm8 = vcmp.lt.s32.totalorder %v354_v61, 15 }
  0x34   : > { %v3468_v14 = vld [vmem:[#allocation2 + $0x2a] sm:$0xff]  ;;  %v827_v17 = vld [vmem:[#allocation2 + $0xe1] sm:$0xff]  ;;  %v826_v19 = vld [vmem:[#allocation2 + $0xd9] sm:$0xff] }
  0x35   : > { %v829_v20 = vld [vmem:[#allocation2 + $0xf1] sm:$0xff]  ;;  %v828_v21 = vld [vmem:[#allocation2 + $0xe9] sm:$0xff]  ;;  %v830_v23 = vld [vmem:[#allocation2 + $0xf9] sm:$0xff]  ;;  %v868_v52 = vsel %vm3500_vm6, %v3468_v14, 0.0 }
  0x36   : > { %v832_v24 = vld [vmem:[#allocation2 + $0xa] sm:$0xff]  ;;  %v3484_v29 = vld [vmem:[#allocation2 + $0x12] sm:$0xff]  ;;  %v3492_v36 = vld [vmem:[#allocation2 + $0x22] sm:$0xff] }
  0x37   : > { %1085 = vrot.lane.b32.xlu1 %v3386_v45, %s3197_s29  ;;  %1091 = vrot.lane.b32.xlu0 %v3390_v46, %s3197_s29  ;;  %v864_v32 = vsel %vm3439_vm4, %v832_v24, 0.0  ;;  %v3504_v43 = vld [vmem:[#allocation2 + $0x3a] sm:$0xff]  ;;  %v3507_v47 = vld [vmem:[#allocation2 + $0x32] sm:$0xff]  ;;  %v3525_v7 = vld [vmem:[#allocation2 + $0x42] sm:$0xff] }
  0x38   : > { %v3558_v24 = vld [vmem:[#allocation2 + $0x62] sm:$0xff]  ;;  %v3570_v34 = vld [vmem:[#allocation2 + $0x6a] sm:$0xff]  ;;  %v3573_v40 = vld [vmem:[#allocation2 + $0x72] sm:$0xff] }
  0x39   : > { %v3585_v61 = vld [vmem:[#allocation2 + $0x7a] sm:$0xff]  ;;  %v3618_v56 = vld [vmem:[#allocation2 + $0xa2] sm:$0xff]  ;;  %v3633_v18 = vld [vmem:[#allocation2 + $0xb2] sm:$0xff] }
  0x3a   : > { %5194 = vst [vmem:[#allocation16_spill] sm:$0xff] %v3618_v56  ;;  %5199 = vst [vmem:[#allocation19_spill] sm:$0xff] %v3633_v18  ;;  %v3645_v16 = vld [vmem:[#allocation2 + $0xba] sm:$0xff] }
  0x3b   : > { %1089 = vrot.lane.b32.xlu1 %v3394_v49, %s3197_s29  ;;  %1095 = vrot.lane.b32.xlu0 %v3398_v50, %s3197_s29  ;;  %5203 = vst [vmem:[#allocation21_spill] sm:$0xff] %v3645_v16 }
  0x3f   : > { %1093 = vrot.lane.b32.xlu1 %v3411_v54, %s3197_s29  ;;  %1099 = vrot.lane.b32.xlu0 %v3422_v58, %s3197_s29 }
  0x43   : > { %1097 = vrot.lane.b32.xlu1 %v3430_v62, %s3197_s29  ;;  %1103 = vrot.lane.b32.xlu0 %v3435_v63, %s3197_s29  ;;  %v3752_v63 = vld [vmem:[#allocation2 + $0x50] sm:$0xff] }
  0x47   : > { %1101 = vrot.lane.b32.xlu1 %v3445_v2, %s3197_s29  ;;  %1107 = vrot.lane.b32.xlu0 %v819_v4, %s3197_s29  ;;  %v266_v4 = vadd.s32 88, %v3375_v41 }
  0x4b   : > { %1105 = vrot.lane.b32.xlu1 %v3454_v5, %s3197_s29  ;;  %1111 = vrot.lane.b32.xlu0 %v821_v6, %s3197_s29  ;;  %v3523_v6 = vld [vmem:[#allocation2 + $0x40] sm:$0xff] }
  0x4f   : > { %1109 = vrot.lane.b32.xlu1 %v820_v8, %s3197_s29  ;;  %1115 = vrot.lane.b32.xlu0 %v823_v9, %s3197_s29  ;;  %v870_v9 = vsel %vm3518_vm7, %v3504_v43, 0.0  ;;  %v3630_v8 = vld [vmem:[#allocation2 + $0xaa] sm:$0xff] }
  0x50   : > { %5198 = vst [vmem:[#allocation18_spill] sm:$0xff] %v3630_v8 }
  0x53   : > { %1113 = vrot.lane.b32.xlu1 %v822_v11, %s3197_s29  ;;  %1119 = vrot.lane.b32.xlu0 %v825_v12, %s3197_s29  ;;  %v3540_v11 = vld [vmem:[#allocation2 + $0x4a] sm:$0xff]  ;;  %v368_v12 = vand.u32 15, %v266_v4 }
  0x55   : > { %vm3551_vm9 = vcmp.lt.s32.totalorder %v368_v12, 15  ;;  %v3588_v12 = vld [vmem:[#allocation2 + $0x82] sm:$0xff] }
  0x56   : > { %5184 = vst [vmem:[#allocation10_spill] sm:$0xff] %v3588_v12 }
  0x57   : > { %1117 = vrot.lane.b32.xlu1 %v824_v15, %s3197_s29  ;;  %1123 = vrot.lane.b32.xlu0 %v827_v17, %s3197_s29  ;;  %v268_v15 = vadd.s32 104, %v3375_v41  ;;  %v3543_v17 = vld [vmem:[#allocation2 + $0x52] sm:$0xff] }
  0x5b   : > { %1121 = vrot.lane.b32.xlu1 %v826_v19, %s3197_s29  ;;  %1127 = vrot.lane.b32.xlu0 %v829_v20, %s3197_s29  ;;  %v872_v19 = vsel %vm3536_vm8, %v3540_v11, 0.0 }
  0x5f   : > { %1125 = vrot.lane.b32.xlu1 %v828_v21, %s3197_s29  ;;  %1195 = vrot.lane.b32.xlu0 %v831_v22, %s3198_s30  ;;  %v3555_v21 = vld [vmem:[#allocation2 + $0x5a] sm:$0xff]  ;;  %v382_v22 = vand.u32 15, %v268_v15 }
  0x60   : > { %v874_v28 = vsel %vm3551_vm9, %v3555_v21, 0.0 }
  0x61   : > { %vm3566_vm10 = vcmp.lt.s32.totalorder %v382_v22, 15  ;;  %v3600_v22 = vld [vmem:[#allocation2 + $0x8a] sm:$0xff] }
  0x62   : > { %v876_v44 = vsel %vm3566_vm10, %v3570_v34, 0.0  ;;  %5188 = vst [vmem:[#allocation12_spill] sm:$0xff] %v3600_v22 }
  0x63   : > { %1129 = vrot.lane.b32.xlu1 %v830_v23, %s3197_s29  ;;  %1199 = vrot.lane.b32.xlu0 %v3484_v29, %s3198_s30  ;;  %v270_v23 = vadd.s32 120, %v3375_v41 }
  0x65   : > { %v396_v35 = vand.u32 15, %v270_v23 }
  0x67   : > { %1197 = vrot.lane.b32.xlu1 %v864_v32, %s3198_s30  ;;  %1203 = vrot.lane.b32.xlu0 %v3492_v36, %s3198_s30  ;;  %vm3581_vm11 = vcmp.lt.s32.totalorder %v396_v35, 15  ;;  %v3603_v35 = vld [vmem:[#allocation2 + $0x92] sm:$0xff] }
  0x68   : > { %v878_v15 = vsel %vm3581_vm11, %v3585_v61, 0.0  ;;  %5189 = vst [vmem:[#allocation13_spill] sm:$0xff] %v3603_v35 }
  0x6b   : > { %1201 = vrot.lane.b32.xlu1 %v866_v37, %s3198_s30  ;;  %1207 = vrot.lane.b32.xlu0 %v3507_v47, %s3198_s30  ;;  %v272_v37 = vadd.s32 136, %v3375_v41 }
  0x6d   : > { %v410_v4 = vand.u32 15, %v272_v37 }
  0x6f   : > { %1205 = vrot.lane.b32.xlu1 %v868_v52, %s3198_s30  ;;  %1211 = vrot.lane.b32.xlu0 %v3525_v7, %s3198_s30  ;;  %v5181_v52 = vmov 0  ;;  %vm3596_vm12 = vcmp.lt.s32.totalorder %v410_v4, 15  ;;  %v3615_v4 = vld [vmem:[#allocation2 + $0x9a] sm:$0xff] }
  0x70   : > { %v5182_v52 = vsel %vm3581_vm11, 4294967295, %v5181_v52  ;;  %v880_v37 = vsel %vm3596_vm12, %v3600_v22, 0.0  ;;  %5193 = vst [vmem:[#allocation15_spill] sm:$0xff] %v3615_v4 }
  0x71   : > { %5183 = vst [vmem:[#allocation9_spill] sm:$0xff] %v5182_v52  ;;  %v3771_v52 = vld [vmem:[#allocation2 + $0x60] sm:$0xff] }
  0x73   : > { %1209 = vrot.lane.b32.xlu1 %v870_v9, %s3198_s30  ;;  %1215 = vrot.lane.b32.xlu0 %v3543_v17, %s3198_s30  ;;  %v274_v9 = vadd.s32 152, %v3375_v41 }
  0x75   : > { %v424_v23 = vand.u32 15, %v274_v9 }
  0x77   : > { %1213 = vrot.lane.b32.xlu1 %v872_v19, %s3198_s30  ;;  %1219 = vrot.lane.b32.xlu0 %v3558_v24, %s3198_s30  ;;  %v5185_v19 = vmov 0  ;;  %vm3611_vm13 = vcmp.lt.s32.totalorder %v424_v23, 15  ;;  %v5195_v23 = vmov 0 }
  0x78   : > { %v5186_v19 = vsel %vm3596_vm12, 4294967295, %v5185_v19  ;;  %vm2364_vm12 = vcmask 1043456  }
  0x79   : > { %5187 = vst [vmem:[#allocation11_spill] sm:$0xff] %v5186_v19 }
  0x7b   : > { %1217 = vrot.lane.b32.xlu1 %v874_v28, %s3198_s30  ;;  %1223 = vrot.lane.b32.xlu0 %v3573_v40, %s3198_s30  ;;  %v276_v28 = vadd.s32 168, %v3375_v41 }
  0x7d   : > { %v438_v9 = vand.u32 15, %v276_v28  ;;  %v452_v28 = vand.u32 15, %v278_v59  ;;  %v466_v59 = vand.u32 15, %v280_v48  ;;  %v857_v48 = vld [vmem:[#allocation2 + $0xd2] sm:$0xff] }
  0x7f   : > { %1221 = vrot.lane.b32.xlu1 %v876_v44, %s3198_s30  ;;  %1227 = vrot.lane.b32.xlu0 %v3588_v12, %s3198_s30  ;;  %v5190_v44 = vmov 0  ;;  %vm3626_vm14 = vcmp.lt.s32.totalorder %v438_v9, 15  ;;  %vm3641_vm15 = vcmp.lt.s32.totalorder %v452_v28, 15  ;;  %v5200_v9 = vmov 0  ;;  %v856_v28 = vld [vmem:[#allocation2 + $0xca] sm:$0xff] }
  0x80   : > { %v5191_v44 = vsel %vm3611_vm13, 4294967295, %v5190_v44  ;;  %v5196_v23 = vsel %vm3626_vm14, 4294967295, %v5195_v23  ;;  %v5201_v9 = vsel %vm3641_vm15, 4294967295, %v5200_v9  ;;  %vm3653_vm1 = vcmp.lt.s32.totalorder %v466_v59, 15  ;;  %v858_v59 = vld [vmem:[#allocation2 + $0xda] sm:$0xff] }
  0x81   : > { %5192 = vst [vmem:[#allocation14_spill] sm:$0xff] %v5191_v44  ;;  %5197 = vst [vmem:[#allocation17_spill] sm:$0xff] %v5196_v23  ;;  %v855_v44 = vld [vmem:[#allocation2 + $0xc2] sm:$0xff]  ;;  %v5204_v23 = vmov 0 }
  0x82   : > { %5202 = vst [vmem:[#allocation20_spill] sm:$0xff] %v5201_v9  ;;  %v5205_v23 = vsel %vm3653_vm1, 4294967295, %v5204_v23 }
  0x83   : > { %1225 = vrot.lane.b32.xlu1 %v878_v15, %s3198_s30  ;;  %1231 = vrot.lane.b32.xlu0 %v3603_v35, %s3198_s30  ;;  %v882_v15 = vsel %vm3611_vm13, %v3615_v4, 0.0  ;;  %5206 = vst [vmem:[#allocation22_spill] sm:$0xff] %v5205_v23  ;;  %v861_v35 = vld [vmem:[#allocation2 + $0xf2] sm:$0xff] }
  0x87   : > { %1229 = vrot.lane.b32.xlu1 %v880_v37, %s3198_s30  ;;  %1235 = vrot.lane.b32.xlu0 %v3618_v56, %s3198_s30  ;;  %v884_v37 = vsel %vm3626_vm14, %v3630_v8, 0.0  ;;  %v284_v56 = vadd.s32 232, %v3375_v41 }
  0x89   : > { %v494_v9 = vand.u32 15, %v284_v56  ;;  %v860_v56 = vld [vmem:[#allocation2 + $0xea] sm:$0xff] }
  0x8b   : > { %1233 = vrot.lane.b32.xlu1 %v882_v15, %s3198_s30  ;;  %1239 = vrot.lane.b32.xlu0 %v3633_v18, %s3198_s30  ;;  %v886_v15 = vsel %vm3641_vm15, %v3645_v16, 0.0  ;;  %v480_v18 = vand.u32 15, %v282_v3  ;;  %v286_v3 = vadd.s32 248, %v3375_v41  ;;  %v859_v16 = vld [vmem:[#allocation2 + $0xe2] sm:$0xff] }
  0x8d   : > { %vm3664_vm0 = vcmp.lt.s32.totalorder %v480_v18, 15  ;;  %v508_v23 = vand.u32 15, %v286_v3  ;;  %v862_v3 = vld [vmem:[#allocation2 + $0xfa] sm:$0xff] }
  0x8f   : > { %1237 = vrot.lane.b32.xlu1 %v884_v37, %s3198_s30  ;;  %1243 = vrot.lane.b32.xlu0 %v855_v44, %s3198_s30  ;;  %v888_v37 = vsel %vm3653_vm1, %v856_v28, 0.0  ;;  %v5207_v44 = vmov 0  ;;  %v291_v28 = vand.u32 15, %v3375_v41  ;;  %vm3678_vm1 = vcmp.lt.s32.totalorder %v494_v9, 15 }
  0x90   : > { %v3658_v8 = vpop.permute.xlu0 %1067  ;;  %v5208_v44 = vsel %vm3664_vm0, 4294967295, %v5207_v44  ;;  %vm3694_vm15 = vcmp.lt.s32.totalorder %v508_v23, 15  ;;  %v5218_v9 = vmov 0  ;;  %v899_v23 = vsel %vm3400_vm2, %v3420_v57, 0.0 }
  0x91   : > { %5209 = vst [vmem:[#allocation23_spill] sm:$0xff] %v5208_v44  ;;  %v5219_v9 = vsel %vm3694_vm15, 4294967295, %v5218_v9 }
  0x92   : > { %5220 = vst [vmem:[#allocation28_spill] sm:$0xff] %v5219_v9 }
  0x93   : > { %1241 = vrot.lane.b32.xlu1 %v886_v15, %s3198_s30  ;;  %1247 = vrot.lane.b32.xlu0 %v857_v48, %s3198_s30  ;;  %v890_v15 = vsel %vm3664_vm0, %v858_v59, 0.0  ;;  %v5211_v48 = vmov 0  ;;  %vm3687_vm0 = vcmp.gt.s32.totalorder %v291_v28, 0  ;;  %v894_v28 = vsel %vm3694_vm15, %v862_v3, 0.0 }
  0x94   : > { %v3669_v19 = vpop.permute.xlu0 %1069  ;;  %v5212_v48 = vsel %vm3678_vm1, 4294967295, %v5211_v48  ;;  %v263_v3 = vadd.s32 64, %v3375_v41 }
  0x95   : > { %5213 = vst [vmem:[#allocation25_spill] sm:$0xff] %v5212_v48 }
  0x97   : > { %1245 = vrot.lane.b32.xlu1 %v888_v37, %s3198_s30  ;;  %1251 = vrot.lane.b32.xlu0 %v859_v16, %s3198_s30  ;;  %v892_v37 = vsel %vm3678_vm1, %v860_v56, 0.0 }
  0x99   : > { %v3676_v18 = vpop.permute.xlu1 %1071  ;;  %v3682_v4 = vpop.permute.xlu0 %1075 }
  0x9a   : > { %5210 = vst [vmem:[#allocation24_spill] sm:$0xff] %v3676_v18  ;;  %5214 = vst [vmem:[#allocation26_spill] sm:$0xff] %v3682_v4 }
  0x9b   : > { %1249 = vrot.lane.b32.xlu1 %v890_v15, %s3198_s30  ;;  %1255 = vrot.lane.b32.xlu0 %v861_v35, %s3198_s30  ;;  %v897_v15 = vsel %vm3687_vm0, %v3413_v55, 0.0  ;;  %v261_v35 = vadd.s32 48, %v3375_v41  ;;  %v3806_v55 = vld [vmem:[#allocation2 + $0x68] sm:$0xff] }
  0x9d   : > { %v3692_v16 = vpop.permute.xlu1 %1073  ;;  %v3701_v44 = vpop.permute.xlu0 %1079 }
  0x9e   : > { %5217 = vst [vmem:[#allocation27_spill] sm:$0xff] %v3692_v16  ;;  %5221 = vst [vmem:[#allocation29_spill] sm:$0xff] %v3701_v44  ;;  %v333_v44 = vand.u32 15, %v261_v35  ;;  %v347_v35 = vand.u32 15, %v263_v3 }
  0x9f   : > { %1253 = vrot.lane.b32.xlu1 %v892_v37, %s3198_s30  ;;  %1323 = vrot.lane.b32.xlu0 %v897_v15, %s3199_s4  ;;  %v3716_v37 = vld [vmem:[#allocation2 + $0x30] sm:$0xff] }
  0xa0   : > { %v901_v15 = vsel %vm3407_vm3, %v3716_v37, 0.0  ;;  %vm3731_vm15 = vcmp.gt.s32.totalorder %v333_v44, 0  ;;  %vm3748_vm1 = vcmp.gt.s32.totalorder %v347_v35, 0 }
  0xa1   : > { %v3707_v56 = vpop.permute.xlu1 %1077  ;;  %v3713_v48 = vpop.permute.xlu0 %1083 }
  0xa2   : > { %5222 = vst [vmem:[#allocation30_spill] sm:$0xff] %v3707_v56  ;;  %5223 = vst [vmem:[#allocation31_spill] sm:$0xff] %v3713_v48  ;;  %v3722_v56 = vld [vmem:[#allocation2 + $0x18] sm:$0xff]  ;;  %v265_v48 = vadd.s32 80, %v3375_v41 }
  0xa3   : > { %1257 = vrot.lane.b32.xlu1 %v894_v28, %s3198_s30  ;;  %1327 = vrot.lane.b32.xlu0 %v899_v23, %s3199_s4  ;;  %5225 = vst [vmem:[#allocation33_spill] sm:$0xff] %v3722_v56  ;;  %v3739_v23 = vld [vmem:[#allocation2 + $0x28] sm:$0xff]  ;;  %s3203_s30 = smov 28  }
  0xa4   : > { %v361_v3 = vand.u32 15, %v265_v48 }
  0xa5   : > { %v3719_v9 = vpop.permute.xlu1 %1081  ;;  %v3727_v5 = vpop.permute.xlu0 %1087 }
  0xa6   : > { %5224 = vst [vmem:[#allocation32_spill] sm:$0xff] %v3719_v9  ;;  %5226 = vst [vmem:[#allocation34_spill] sm:$0xff] %v3727_v5  ;;  %v903_v5 = vsel %vm3731_vm15, %v3523_v6, 0.0  ;;  %vm3767_vm14 = vcmp.gt.s32.totalorder %v361_v3, 0 }
  0xa7   : > { %1325 = vrot.lane.b32.xlu1 %v3722_v56, %s3199_s4  ;;  %1331 = vrot.lane.b32.xlu0 %v901_v15, %s3199_s4  ;;  %v267_v15 = vadd.s32 96, %v3375_v41  ;;  %v3758_v56 = vld [vmem:[#allocation2 + $0x38] sm:$0xff] }
  0xa9   : > { %v3736_v9 = vpop.permute.xlu1 %1085  ;;  %v3744_v4 = vpop.permute.xlu0 %1091  ;;  %v375_v35 = vand.u32 15, %v267_v15  ;;  %v3789_v15 = vld [vmem:[#allocation2 + $0x70] sm:$0xff] }
  0xaa   : > { %5229 = vst [vmem:[#allocation35_spill] sm:$0xff] %v3736_v9  ;;  %5230 = vst [vmem:[#allocation36_spill] sm:$0xff] %v3744_v4  ;;  %v905_v4 = vsel %vm3748_vm1, %v3752_v63, 0.0 }
  0xab   : > { %1329 = vrot.lane.b32.xlu1 %v3739_v23, %s3199_s4  ;;  %1335 = vrot.lane.b32.xlu0 %v903_v5, %s3199_s4  ;;  %v3776_v5 = vld [vmem:[#allocation2 + $0x48] sm:$0xff]  ;;  %vm3785_vm13 = vcmp.gt.s32.totalorder %v375_v35, 0 }
  0xac   : > { %v909_v22 = vsel %vm3785_vm13, %v3789_v15, 0.0 }
  0xad   : > { %v3755_v9 = vpop.permute.xlu1 %1089  ;;  %v3763_v16 = vpop.permute.xlu0 %1095 }
  0xae   : > { %5233 = vst [vmem:[#allocation37_spill] sm:$0xff] %v3755_v9  ;;  %5234 = vst [vmem:[#allocation38_spill] sm:$0xff] %v3763_v16  ;;  %v907_v16 = vsel %vm3767_vm14, %v3771_v52, 0.0 }
  0xaf   : > { %1333 = vrot.lane.b32.xlu1 %v3758_v56, %s3199_s4  ;;  %1339 = vrot.lane.b32.xlu0 %v905_v4, %s3199_s4  ;;  %v3794_v4 = vld [vmem:[#allocation2 + $0x58] sm:$0xff] }
  0xb1   : > { %v3773_v9 = vpop.permute.xlu1 %1093  ;;  %v3781_v12 = vpop.permute.xlu0 %1099 }
  0xb2   : > { %5237 = vst [vmem:[#allocation39_spill] sm:$0xff] %v3773_v9  ;;  %5238 = vst [vmem:[#allocation40_spill] sm:$0xff] %v3781_v12 }
  0xb3   : > { %1337 = vrot.lane.b32.xlu1 %v3776_v5, %s3199_s4  ;;  %1343 = vrot.lane.b32.xlu0 %v907_v16, %s3199_s4 }
  0xb5   : > { %v3791_v9 = vpop.permute.xlu1 %1097  ;;  %v3799_v12 = vpop.permute.xlu0 %1103 }
  0xb6   : > { %5241 = vst [vmem:[#allocation41_spill] sm:$0xff] %v3791_v9  ;;  %5242 = vst [vmem:[#allocation42_spill] sm:$0xff] %v3799_v12  ;;  %v2262_v12 = vld [vmem:[%s5093_s1] sm:$0xff] }
  0xb7   : > { %1341 = vrot.lane.b32.xlu1 %v3794_v4, %s3199_s4  ;;  %1347 = vrot.lane.b32.xlu0 %v909_v22, %s3199_s4  ;;  %v2263_v22 = vld [vmem:[%s5093_s1 + $0x8] sm:$0xff] }
  0xb9   : > { %v3803_v35 = vpop.permute.xlu1 %1101  ;;  %v3808_v9 = vpop.permute.xlu0 %1107  ;;  %v5372_v3 = vld [vmem:[#allocation39_spill] sm:$0xff] }
  0xba   : > { %5243 = vst [vmem:[#allocation43_spill] sm:$0xff] %v3803_v35  ;;  %5244 = vst [vmem:[#allocation44_spill] sm:$0xff] %v3808_v9  ;;  %v3048_v9 = vpack.c.bf16 %v2263_v22, %v2262_v12 }
  0xbb   : > { %1345 = vrot.lane.b32.xlu1 %v3806_v55, %s3199_s4  ;;  %1423 = vrot.lane.b32.xlu0 %v3342_v27, %s3200_s5  ;;  %v5248_v27 = vsel %vm3439_vm4, %v3443_v1, 0.0  ;;  %v967_v1 = vsel %vm3687_vm0, %v3420_v57, 0.0 }
  0xbc   : > { %3049 = vmatprep.subr.bf16.mxu0 %v3048_v9  ;;  %3056 = vmatprep.subr.bf16.mxu1 %v3048_v9 }
  0xbd   : > { %v3812_v16 = vpop.permute.xlu1 %1105  ;;  %v3822_v35 = vpop.permute.xlu0 %1111  ;;  %3051 = vmatpush3.bf16.msra.mxu0 %v3048_v9  ;;  %3059 = vmatpush3.bf16.msra.mxu1 %v3048_v9 }
  0xbe   : > { %5245 = vst [vmem:[#allocation45_spill] sm:$0xff] %v3812_v16  ;;  %5246 = vst [vmem:[#allocation46_spill] sm:$0xff] %v3822_v35  ;;  %v2264_v16 = vld [vmem:[%s5093_s1 + $0x10] sm:$0xff] }
  0xbf   : > { %1421 = vrot.lane.b32.xlu1 %v3333_v25, %s3200_s5  ;;  %1551 = vrot.lane.b32.xlu0 %v5248_v27, %s3201_s10  ;;  %v2265_v25 = vld [vmem:[%s5093_s1 + $0x18] sm:$0xff] }
  0xc0   : > { %v3052_v22 = vpack.c.bf16 %v2265_v25, %v2264_v16 }
  0xc1   : > { %v3826_v18 = vpop.permute.xlu1 %1109  ;;  %v3839_v12 = vpop.permute.xlu0 %1115 }
  0xc2   : > { %5247 = vst [vmem:[#allocation47_spill] sm:$0xff] %v3826_v18  ;;  %5249 = vst [vmem:[#allocation48_spill] sm:$0xff] %v3839_v12  ;;  %3053 = vmatprep.subr.bf16.mxu0 %v3052_v22  ;;  %3057 = vmatprep.subr.bf16.mxu1 %v3052_v22  ;;  %v1008_v18 = vsel %vm3500_vm6, %v3540_v11, 0.0 }
  0xc3   : > { %1549 = vrot.lane.b32.xlu1 %v3484_v29, %s3201_s10  ;;  %1679 = vrot.lane.b32.xlu0 %v3739_v23, %s3202_s26  ;;  %v2266_v29 = vld [vmem:[%s5093_s1 + $0x20] sm:$0xf] }
  0xc4   : > { %3055 = vmatpush3.bf16.msra.mxu0 %v3052_v22  ;;  %3060 = vmatpush3.bf16.msra.mxu1 %v3052_v22 }
  0xc5   : > { %v3846_v27 = vpop.permute.xlu1 %1113  ;;  %v3850_v35 = vpop.permute.xlu0 %1119  ;;  %2998 = vmatprep.subr.msk.mxu0 %vm2364_vm12, %v2266_v29  ;;  %3058 = vmatprep.subr.msk.mxu1 %vm2364_vm12, %v2266_v29 }
  0xc6   : > { %5250 = vst [vmem:[#allocation49_spill] sm:$0xff] %v3846_v27  ;;  %5251 = vst [vmem:[#allocation50_spill] sm:$0xff] %v3850_v35 }
  0xc7   : > { %1677 = vrot.lane.b32.xlu1 %v967_v1, %s3202_s26  ;;  %1425 = vrot.lane.b32.xlu0 %v3335_v26, %s3200_s5 }
  0xc8   : > { %2999 = vmatpush3.msk.msra.mxu0 %vm2364_vm12, %v2266_v29  ;;  %3061 = vmatpush3.msk.msra.mxu1 %vm2364_vm12, %v2266_v29  ;;  %v5258_v29 = vsel %vm3464_vm5, %v3468_v14, 0.0  ;;  %vm5156_vm12 = vcmask 261120  }
  0xc9   : > { %v3856_v9 = vpop.permute.xlu1 %1117  ;;  %v3860_v16 = vpop.permute.xlu0 %1123 }
  0xca   : > { %5252 = vst [vmem:[#allocation51_spill] sm:$0xff] %v3856_v9  ;;  %5253 = vst [vmem:[#allocation52_spill] sm:$0xff] %v3860_v16 }
  0xcb   : > { %1775 = vrot.lane.b32.xlu1 %v3335_v26, %s3203_s30  ;;  %1903 = vrot.lane.b32.xlu0 %v3492_v36, %s3204_s6 }
  0xcd   : > { %v3864_v25 = vpop.permute.xlu1 %1121  ;;  %v3868_v22 = vpop.permute.xlu0 %1127 }
  0xce   : > { %5254 = vst [vmem:[#allocation53_spill] sm:$0xff] %v3864_v25  ;;  %5255 = vst [vmem:[#allocation54_spill] sm:$0xff] %v3868_v22  ;;  %v938_v25 = vsel %vm3500_vm6, %v3504_v43, 0.0  ;;  %vm5283_vm6 = vcmask 31744  }
  0xcf   : > { %1777 = vrot.lane.b32.xlu1 %v3354_v31, %s3203_s30  ;;  %1553 = vrot.lane.b32.xlu0 %v3492_v36, %s3201_s10  ;;  %v5259_v36 = vsel %vm3439_vm4, %v3468_v14, 0.0  ;;  %vm2031_vm4 = vcmask 64512  }
  0xd1   : > { %v3872_v1 = vpop.permute.xlu1 %1125  ;;  %v3876_v16 = vpop.permute.xlu0 %1195 }
  0xd2   : > { %5256 = vst [vmem:[#allocation55_spill] sm:$0xff] %v3872_v1 }
  0xd3   : > { %1427 = vrot.lane.b32.xlu1 %v3354_v31, %s3200_s5  ;;  %1555 = vrot.lane.b32.xlu0 %v5258_v29, %s3201_s10  ;;  %v969_v31 = vsel %vm3400_vm2, %v3716_v37, 0.0 }
  0xd5   : > { %v3880_v26 = vpop.permute.xlu1 %1129  ;;  %v3887_v22 = vpop.permute.xlu0 %1199 }
  0xd6   : > { %5257 = vst [vmem:[#allocation56_spill] sm:$0xff] %v3880_v26 }
  0xd7   : > { %1905 = vrot.lane.b32.xlu1 %v5259_v36, %s3204_s6  ;;  %1683 = vrot.lane.b32.xlu0 %v3758_v56, %s3202_s26 }
  0xd9   : > { %v3897_v1 = vpop.permute.xlu1 %1197  ;;  %v3901_v26 = vpop.permute.xlu0 %1203 }
  0xdb   : > { %1681 = vrot.lane.b32.xlu1 %v969_v31, %s3202_s26  ;;  %1429 = vrot.lane.b32.xlu0 %v3350_v30, %s3200_s5 }
  0xdd   : > { %v3904_v29 = vpop.permute.xlu1 %1201  ;;  %v3908_v0 = vpop.permute.xlu0 %1207 }
  0xdf   : > { %1779 = vrot.lane.b32.xlu1 %v3350_v30, %s3203_s30  ;;  %1907 = vrot.lane.b32.xlu0 %v3507_v47, %s3204_s6 }
  0xe1   : > { %v3912_v14 = vpop.permute.xlu1 %1205  ;;  %v3916_v36 = vpop.permute.xlu0 %1211 }
  0xe3   : > { %1781 = vrot.lane.b32.xlu1 %v3370_v39, %s3203_s30  ;;  %1557 = vrot.lane.b32.xlu0 %v3507_v47, %s3201_s10  ;;  %v5260_v47 = vsel %vm3464_vm5, %v3504_v43, 0.0  ;;  %vm5157_vm5 = vcmask 97280  }
  0xe5   : > { %v3920_v31 = vpop.permute.xlu1 %1209  ;;  %v3927_v30 = vpop.permute.xlu0 %1215 }
  0xe7   : > { %1431 = vrot.lane.b32.xlu1 %v3370_v39, %s3200_s5  ;;  %1559 = vrot.lane.b32.xlu0 %v938_v25, %s3201_s10  ;;  %v5262_v39 = vsel %vm3407_vm3, %v3523_v6, 0.0 }
  0xe9   : > { %v3931_v35 = vpop.permute.xlu1 %1213  ;;  %v3934_v9 = vpop.permute.xlu0 %1219 }
  0xeb   : > { %1909 = vrot.lane.b32.xlu1 %v5260_v47, %s3204_s6  ;;  %1687 = vrot.lane.b32.xlu0 %v3776_v5, %s3202_s26 }
  0xed   : > { %v3941_v12 = vpop.permute.xlu1 %1217  ;;  %v3945_v27 = vpop.permute.xlu0 %1223 }
  0xee   : > { %5261 = vst [vmem:[#allocation57_spill] sm:$0xff] %v3945_v27 }
  0xef   : > { %1685 = vrot.lane.b32.xlu1 %v5262_v39, %s3202_s26  ;;  %1433 = vrot.lane.b32.xlu0 %v3358_v33, %s3200_s5  ;;  %v940_v39 = vsel %vm3518_vm7, %v3540_v11, 0.0 }
  0xf1   : > { %v3952_v25 = vpop.permute.xlu1 %1221  ;;  %v3956_v13 = vpop.permute.xlu0 %1227 }
  0xf2   : > { %5263 = vst [vmem:[#allocation58_spill] sm:$0xff] %v3952_v25  ;;  %5264 = vst [vmem:[#allocation59_spill] sm:$0xff] %v3956_v13  ;;  %v1014_v13 = vsel %vm3551_vm9, %v3585_v61, 0.0 }
  0xf3   : > { %1783 = vrot.lane.b32.xlu1 %v3358_v33, %s3203_s30  ;;  %1911 = vrot.lane.b32.xlu0 %v3525_v7, %s3204_s6 }
  0xf5   : > { %v3960_v43 = vpop.permute.xlu1 %1225  ;;  %v3964_v47 = vpop.permute.xlu0 %1231 }
  0xf6   : > { %5265 = vst [vmem:[#allocation60_spill] sm:$0xff] %v3960_v43  ;;  %5266 = vst [vmem:[#allocation61_spill] sm:$0xff] %v3964_v47  ;;  %v269_v43 = vadd.s32 112, %v3375_v41 }
  0xf7   : > { %1785 = vrot.lane.b32.xlu1 %v3386_v45, %s3203_s30  ;;  %1561 = vrot.lane.b32.xlu0 %v3525_v7, %s3201_s10  ;;  %v973_v7 = vsel %vm3731_vm15, %v3752_v63, 0.0 }
  0xf8   : > { %v389_v25 = vand.u32 15, %v269_v43 }
  0xf9   : > { %v3968_v6 = vpop.permute.xlu1 %1229  ;;  %v3975_v33 = vpop.permute.xlu0 %1235 }
  0xfa   : > { %5267 = vst [vmem:[#allocation62_spill] sm:$0xff] %v3968_v6  ;;  %5268 = vst [vmem:[#allocation63_spill] sm:$0xff] %v3975_v33 }
  0xfb   : > { %1435 = vrot.lane.b32.xlu1 %v3386_v45, %s3200_s5  ;;  %1563 = vrot.lane.b32.xlu0 %v940_v39, %s3201_s10 }
  0xfd   : > { %v3982_v47 = vpop.permute.xlu1 %1233  ;;  %v3985_v6 = vpop.permute.xlu0 %1239 }
  0xfe   : > { %5269 = vst [vmem:[#allocation64_spill] sm:$0xff] %v3982_v47  ;;  %5270 = vst [vmem:[#allocation65_spill] sm:$0xff] %v3985_v6 }
  0xff   : > { %1913 = vrot.lane.b32.xlu1 %v1008_v18, %s3204_s6  ;;  %1691 = vrot.lane.b32.xlu0 %v3794_v4, %s3202_s26 }
 0x101   : > { %v3991_v33 = vpop.permute.xlu1 %1237  ;;  %v3995_v45 = vpop.permute.xlu0 %1243 }
 0x102   : > { %5271 = vst [vmem:[#allocation66_spill] sm:$0xff] %v3991_v33  ;;  %5272 = vst [vmem:[#allocation67_spill] sm:$0xff] %v3995_v45 }
 0x103   : > { %1689 = vrot.lane.b32.xlu1 %v973_v7, %s3202_s26  ;;  %1437 = vrot.lane.b32.xlu0 %v3380_v42, %s3200_s5 }
 0x105   : > { %v3998_v38 = vpop.permute.xlu1 %1241  ;;  %v4002_v11 = vpop.permute.xlu0 %1247 }
 0x106   : > { %5273 = vst [vmem:[#allocation68_spill] sm:$0xff] %v3998_v38  ;;  %5274 = vst [vmem:[#allocation69_spill] sm:$0xff] %v4002_v11  ;;  %v942_v11 = vsel %vm3536_vm8, %v3555_v21, 0.0  ;;  %v4078_v38 = vld [vmem:[#allocation2 + $0x78] sm:$0xff] }
 0x107   : > { %1787 = vrot.lane.b32.xlu1 %v3380_v42, %s3203_s30  ;;  %1915 = vrot.lane.b32.xlu0 %v3543_v17, %s3204_s6  ;;  %5281 = vst [vmem:[#allocation76_spill] sm:$0xff] %v4078_v38 }
 0x109   : > { %v4006_v18 = vpop.permute.xlu1 %1245  ;;  %v4010_v39 = vpop.permute.xlu0 %1251 }
 0x10a   : > { %5275 = vst [vmem:[#allocation70_spill] sm:$0xff] %v4006_v18  ;;  %5276 = vst [vmem:[#allocation71_spill] sm:$0xff] %v4010_v39  ;;  %v1010_v39 = vsel %vm3518_vm7, %v3555_v21, 0.0  ;;  %vm2130_vm7 = vcmask 162816  }
 0x10b   : > { %1789 = vrot.lane.b32.xlu1 %v3394_v49, %s3203_s30  ;;  %1565 = vrot.lane.b32.xlu0 %v3543_v17, %s3201_s10 }
 0x10d   : > { %v4014_v7 = vpop.permute.xlu1 %1249  ;;  %v4021_v42 = vpop.permute.xlu0 %1255 }
 0x10e   : > { %5277 = vst [vmem:[#allocation72_spill] sm:$0xff] %v4014_v7  ;;  %5278 = vst [vmem:[#allocation73_spill] sm:$0xff] %v4021_v42  ;;  %v975_v7 = vsel %vm3748_vm1, %v3771_v52, 0.0  ;;  %v1012_v42 = vsel %vm3536_vm8, %v3570_v34, 0.0  ;;  %vm5155_vm8 = vcmask 228352  }
 0x10f   : > { %1439 = vrot.lane.b32.xlu1 %v3394_v49, %s3200_s5  ;;  %1567 = vrot.lane.b32.xlu0 %v942_v11, %s3201_s10 }
 0x111   : > { %v4028_v18 = vpop.permute.xlu1 %1253  ;;  %v1324_v17 = vpop.permute.xlu0 %1323 }
 0x112   : > { %5279 = vst [vmem:[#allocation74_spill] sm:$0xff] %v4028_v18 }
 0x113   : > { %1917 = vrot.lane.b32.xlu1 %v1010_v39, %s3204_s6  ;;  %1695 = vrot.lane.b32.xlu0 %v3806_v55, %s3202_s26 }
 0x115   : > { %v4035_v45 = vpop.permute.xlu1 %1257  ;;  %v4040_v49 = vpop.permute.xlu0 %1327 }
 0x116   : > { %5280 = vst [vmem:[#allocation75_spill] sm:$0xff] %v4035_v45 }
 0x117   : > { %1693 = vrot.lane.b32.xlu1 %v975_v7, %s3202_s26  ;;  %1441 = vrot.lane.b32.xlu0 %v3390_v46, %s3200_s5 }
 0x119   : > { %v4042_v60 = vpop.permute.xlu1 %1325  ;;  %v4048_v21 = vpop.permute.xlu0 %1331 }
 0x11b   : > { %1791 = vrot.lane.b32.xlu1 %v3390_v46, %s3203_s30  ;;  %1919 = vrot.lane.b32.xlu0 %v3558_v24, %s3204_s6  ;;  %v944_v46 = vsel %vm3551_vm9, %v3570_v34, 0.0  ;;  %vm2163_vm9 = vcmask 195584  }
 0x11d   : > { %v4050_v11 = vpop.permute.xlu1 %1329  ;;  %v4056_v39 = vpop.permute.xlu0 %1335 }
 0x11f   : > { %1793 = vrot.lane.b32.xlu1 %v3411_v54, %s3203_s30  ;;  %1569 = vrot.lane.b32.xlu0 %v3558_v24, %s3201_s10 }
 0x121   : > { %v4058_v7 = vpop.permute.xlu1 %1333  ;;  %v4067_v45 = vpop.permute.xlu0 %1339 }
 0x123   : > { %1443 = vrot.lane.b32.xlu1 %v3411_v54, %s3200_s5  ;;  %1571 = vrot.lane.b32.xlu0 %v944_v46, %s3201_s10  ;;  %v977_v54 = vsel %vm3767_vm14, %v3789_v15, 0.0  ;;  %v735_v15 = vld [vmem:[#allocation2] sm:$0xff] }
 0x124   : > { %v767_v33 = vsel %vm3687_vm0, %v735_v15, 0.0  ;;  %v4112_v15 = vld [vmem:[#allocation2 + $0x80] sm:$0xff]  ;;  %vm5154_vm0 = vcmask 130048  }
 0x125   : > { %v4072_v18 = vpop.permute.xlu1 %1337  ;;  %v4076_v24 = vpop.permute.xlu0 %1343  ;;  %v1999_v59 = vsel %vm5283_vm6, %v767_v33, %v3658_v8  ;;  %v979_v27 = vsel %vm3785_vm13, %v4112_v15, 0.0  ;;  %vm2267_vm6 = vcmask 293888  }
 0x127   : > { %1921 = vrot.lane.b32.xlu1 %v1012_v42, %s3204_s6  ;;  %1699 = vrot.lane.b32.xlu0 %v4078_v38, %s3202_s26 }
 0x129   : > { %v4083_v6 = vpop.permute.xlu1 %1341  ;;  %v4088_v10 = vpop.permute.xlu0 %1347 }
 0x12a   : > { %5282 = vst [vmem:[#allocation77_spill] sm:$0xff] %v4088_v10 }
 0x12b   : > { %1697 = vrot.lane.b32.xlu1 %v977_v54, %s3202_s26  ;;  %1349 = vrot.lane.b32.xlu0 %v4078_v38, %s3199_s4 }
 0x12d   : > { %v4090_v34 = vpop.permute.xlu1 %1345  ;;  %v1424_v42 = vpop.permute.xlu0 %1423 }
 0x12f   : > { %1795 = vrot.lane.b32.xlu1 %v3398_v50, %s3203_s30  ;;  %1797 = vrot.lane.b32.xlu0 %v3430_v62, %s3203_s30 }
 0x131   : > { %v1422_v46 = vpop.permute.xlu1 %1421  ;;  %v1552_v54 = vpop.permute.xlu0 %1551 }
 0x133   : > { %1445 = vrot.lane.b32.xlu1 %v3398_v50, %s3200_s5  ;;  %1447 = vrot.lane.b32.xlu0 %v3430_v62, %s3200_s5  ;;  %v2032_v62 = vsel %vm2031_vm4, %v1999_v59, %v3876_v16 }
 0x134   : > { %v2065_v20 = vsel %vm5157_vm5, %v2032_v62, %v1324_v17 }
 0x135   : > { %v1550_v47 = vpop.permute.xlu1 %1549  ;;  %v1680_v50 = vpop.permute.xlu0 %1679  ;;  %v2098_v10 = vsel %vm5154_vm0, %v2065_v20, %v1422_v46  ;;  %vm4131_vm0 = vcmp.gt.s32.totalorder %v389_v25, 0  ;;  %v4136_v46 = vld [vmem:[#allocation2 + $0x88] sm:$0xff] }
 0x136   : > { %v2131_v16 = vsel %vm2130_vm7, %v2098_v10, %v1550_v47  ;;  %v736_v10 = vld [vmem:[#allocation2 + $0x8] sm:$0xff] }
 0x137   : > { %1923 = vrot.lane.b32.xlu1 %v3573_v40, %s3204_s6  ;;  %1925 = vrot.lane.b32.xlu0 %v1014_v13, %s3204_s6  ;;  %v946_v13 = vsel %vm3566_vm10, %v3585_v61, 0.0 }
 0x139   : > { %v1678_v38 = vpop.permute.xlu1 %1677  ;;  %v1426_v8 = vpop.permute.xlu0 %1425 }
 0x13a   : > { %v2164_v33 = vsel %vm2163_vm9, %v2131_v16, %v1678_v38 }
 0x13b   : > { %1573 = vrot.lane.b32.xlu1 %v3573_v40, %s3201_s10  ;;  %1701 = vrot.lane.b32.xlu0 %v979_v27, %s3202_s26  ;;  %v911_v27 = vsel %vm4131_vm0, %v4112_v15, 0.0  ;;  %v5390_v40 = vld [vmem:[#allocation57_spill] sm:$0xff] }
 0x13d   : > { %v1776_v17 = vpop.permute.xlu1 %1775  ;;  %v1904_v47 = vpop.permute.xlu0 %1903 }
 0x13e   : > { %v2197_v43 = vsel %vm5155_vm8, %v2164_v33, %v1776_v17  ;;  %vm5286_vm8 = vcmask 31744  }
 0x13f   : > { %1575 = vrot.lane.b32.xlu1 %v946_v13, %s3201_s10  ;;  %v2230_v61 = vsel %vm5156_vm12, %v2197_v43, %v1904_v47  ;;  %1703 = vrot.lane.b32.xlu0 %v4136_v46, %s3202_s26  ;;  %v2000_v25 = vsel %vm5286_vm8, %v736_v10, %v3669_v19  ;;  %vm5287_vm12 = vcmask 130048   ;;  %vm5288_vm8 = vcmask 228352   ;;  %v5291_v47 = vld [vmem:[#allocation6_spill] sm:$0xff] }
 0x140   : > { %3000 = vmatprep.mubr.msk.f32.mxu0 %vm2267_vm6, %v2230_v61  ;;  %v2033_v62 = vsel %vm2031_vm4, %v2000_v25, %v3897_v1  ;;  %v5292_v10 = vsel %vm3400_vm2, %v5291_v47, 0.0  ;;  %vm5298_vm2 = vcmask 228352   ;;  %v5302_v47 = vld [vmem:[#allocation33_spill] sm:$0xff] }
 0x141   : > { %v1778_v38 = vpop.permute.xlu1 %1777  ;;  %v1554_v59 = vpop.permute.xlu0 %1553  ;;  %v2066_v20 = vsel %vm5157_vm5, %v2033_v62, %v4042_v60  ;;  %vm5289_vm5 = vcmask 261120  }
 0x142   : > { %v2099_v13 = vsel %vm5287_vm12, %v2066_v20, %v1424_v42  ;;  %vm5293_vm12 = vcmask 31744   ;;  %v5297_v20 = vld [vmem:[#allocation10_spill] sm:$0xff] }
 0x143   : > { %1351 = vrot.lane.b32.xlu1 %v911_v27, %s3199_s4  ;;  %1353 = vrot.lane.b32.xlu0 %v4136_v46, %s3199_s4  ;;  %v2132_v33 = vsel %vm2130_vm7, %v2099_v13, %v1552_v54  ;;  %v5290_v54 = vld [vmem:[#allocation24_spill] sm:$0xff] }
 0x144   : > { %v2165_v17 = vsel %vm2163_vm9, %v2132_v33, %v1680_v50  ;;  %v2001_v50 = vsel %vm5293_vm12, %v5292_v10, %v5290_v54  ;;  %v4186_v33 = vld [vmem:[#allocation2 + $0x90] sm:$0xff] }
 0x145   : > { %v1428_v16 = vpop.permute.xlu1 %1427  ;;  %v1556_v19 = vpop.permute.xlu0 %1555  ;;  %v2198_v43 = vsel %vm5288_vm8, %v2165_v17, %v1778_v38  ;;  %v2034_v61 = vsel %vm2031_vm4, %v2001_v50, %v3887_v22  ;;  %v5295_v38 = vld [vmem:[#allocation12_spill] sm:$0xff]  ;;  %vm5296_vm8 = vcmask 130048   ;;  %v5301_v54 = vld [vmem:[#allocation27_spill] sm:$0xff] }
 0x146   : > { %v1016_v25 = vsel %vm3566_vm10, %v5295_v38, 0.0  ;;  %vm5299_vm10 = vcmask 261120   ;;  %v2002_v10 = vsel %vm5293_vm12, %v5302_v47, %v5301_v54  ;;  %vm5308_vm12 = vcmask 261120  }
 0x147   : > { %1799 = vrot.lane.b32.xlu1 %v3422_v58, %s3203_s30  ;;  %1801 = vrot.lane.b32.xlu0 %v3445_v2, %s3203_s30 }
 0x149   : > { %v1906_v1 = vpop.permute.xlu1 %1905  ;;  %v1684_v42 = vpop.permute.xlu0 %1683 }
 0x14a   : > { %v2231_v60 = vsel %vm5289_vm5, %v2198_v43, %v1906_v1  ;;  %vm5294_vm5 = vcmask 97280  }
 0x14b   : > { %1449 = vrot.lane.b32.xlu1 %v3422_v58, %s3200_s5  ;;  %3001 = vmatmul.mubr.msk.f32.vlgmr.msra.gmra.mrb[0].mxu0 %vm2267_vm6, %v2231_v60  ;;  %v2067_v58 = vsel %vm5294_vm5, %v2034_v61, %v4040_v49  ;;  %v981_v49 = vsel %vm4131_vm0, %v4186_v33, 0.0  ;;  %v948_v60 = vsel %vm3581_vm11, %v5295_v38, 0.0  ;;  %v2035_v61 = vsel %vm2031_vm4, %v2002_v10, %v3904_v29 }
 0x14c   : > { %1451 = vrot.lane.b32.xlu0 %v3445_v2, %s3200_s5  ;;  %v2100_v62 = vsel %vm5296_vm8, %v2067_v58, %v1426_v8  ;;  %v403_v8 = vand.u32 15, %v271_v51  ;;  %vm5305_vm8 = vcmask 97280  }
 0x14d   : > { %v1682_v27 = vpop.permute.xlu1 %1681  ;;  %v1430_v13 = vpop.permute.xlu0 %1429  ;;  %v2133_v22 = vsel %vm2130_vm7, %v2100_v62, %v1554_v59  ;;  %v2068_v58 = vsel %vm5305_vm8, %v2035_v61, %v4050_v11  ;;  %vm5312_vm8 = vcmask 31744   ;;  %v5317_v61 = vld [vmem:[#allocation15_spill] sm:$0xff] }
 0x14e   : > { %v2166_v2 = vsel %vm2163_vm9, %v2133_v22, %v1682_v27  ;;  %vm4207_vm5 = vcmp.gt.s32.totalorder %v403_v8, 0  ;;  %v5311_v8 = vsel %vm3407_vm3, %v3420_v57, 0.0  ;;  %vm5316_vm3 = vcmask 228352  }
 0x14f   : > { %1927 = vrot.lane.b32.xlu1 %v5297_v20, %s3204_s6  ;;  %v913_v62 = vsel %vm4207_vm5, %v4186_v33, 0.0 }
 0x150   : > { %1929 = vrot.lane.b32.xlu0 %v1016_v25, %s3204_s6  ;;  %v4214_v25 = vld [vmem:[#allocation2 + $0x98] sm:$0xff] }
 0x151   : > { %v1780_v17 = vpop.permute.xlu1 %1779  ;;  %v1908_v43 = vpop.permute.xlu0 %1907 }
 0x152   : > { %v2199_v32 = vsel %vm5298_vm2, %v2166_v2, %v1780_v17  ;;  %vm5306_vm2 = vcmask 130048  }
 0x153   : > { %1577 = vrot.lane.b32.xlu1 %v5297_v20, %s3201_s10  ;;  %v2232_v59 = vsel %vm5299_vm10, %v2199_v32, %v1908_v43  ;;  %v2101_v51 = vsel %vm5306_vm2, %v2068_v58, %v1428_v16  ;;  %vm5307_vm10 = vcmask 228352   ;;  %v5309_v32 = vld [vmem:[#allocation7_spill] sm:$0xff]  ;;  %vm5314_vm2 = vcmask 97280   ;;  %v5318_v58 = vld [vmem:[#allocation13_spill] sm:$0xff] }
 0x154   : > { %1705 = vrot.lane.b32.xlu0 %v981_v49, %s3202_s26  ;;  %3003 = vmatprep.mubr.msk.f32.mxu0 %vm2267_vm6, %v2232_v59  ;;  %v2134_v29 = vsel %vm2130_vm7, %v2101_v51, %v1556_v19  ;;  %v5310_v19 = vld [vmem:[#allocation26_spill] sm:$0xff] }
 0x155   : > { %v1782_v50 = vpop.permute.xlu1 %1781  ;;  %v1558_v38 = vpop.permute.xlu0 %1557  ;;  %v2167_v22 = vsel %vm2163_vm9, %v2134_v29, %v1684_v42  ;;  %v2003_v42 = vsel %vm5312_vm8, %v5311_v8, %v5310_v19  ;;  %v5322_v8 = vld [vmem:[#allocation11_spill] sm:$0xff] }
 0x156   : > { %v2200_v2 = vsel %vm5307_vm10, %v2167_v22, %v1782_v50  ;;  %v2036_v43 = vsel %vm2031_vm4, %v2003_v42, %v3901_v26  ;;  %vm5315_vm10 = vcmask 130048   ;;  %v4262_v22 = vld [vmem:[#allocation2 + $0xa0] sm:$0xff] }
 0x157   : > { %1579 = vrot.lane.b32.xlu1 %v948_v60, %s3201_s10  ;;  %v5313_v60 = vld [vmem:[#allocation8_spill] sm:$0xff]  ;;  %v2069_v54 = vsel %vm5314_vm2, %v2036_v43, %v4048_v21  ;;  %v1018_v21 = vsel %vm3581_vm11, %v5317_v61, 0.0  ;;  %vm5320_vm11 = vmmov %vm5314_vm2 }
 0x158   : > { %1707 = vrot.lane.b32.xlu0 %v4214_v25, %s3202_s26  ;;  %v2102_v47 = vsel %vm5315_vm10, %v2069_v54, %v1430_v13  ;;  %v273_v13 = vadd.s32 144, %v3375_v41  ;;  %vm5321_vm2 = vmmov %vm5315_vm10  ;;  %vm5323_vm10 = vnez %v5322_v8 }
 0x159   : > { %v1432_v20 = vpop.permute.xlu1 %1431  ;;  %v1560_v11 = vpop.permute.xlu0 %1559  ;;  %v2135_v57 = vsel %vm2130_vm7, %v2102_v47, %v1558_v38  ;;  %v950_v42 = vsel %vm5323_vm10, %v5317_v61, 0.0  ;;  %v773_v47 = vsel %vm3731_vm15, %v3716_v37, 0.0  ;;  %vm5330_vm15 = vcmask 97280  }
 0x15b   : > { %1355 = vrot.lane.b32.xlu1 %v913_v62, %s3199_s4  ;;  %v5319_v62 = vld [vmem:[#allocation30_spill] sm:$0xff] }
 0x15c   : > { %1357 = vrot.lane.b32.xlu0 %v4214_v25, %s3199_s4  ;;  %v2004_v29 = vsel %vm5312_vm8, %v3739_v23, %v5319_v62  ;;  %vm5327_vm8 = vcmask 261120  }
 0x15d   : > { %v1910_v17 = vpop.permute.xlu1 %1909  ;;  %v1688_v49 = vpop.permute.xlu0 %1687  ;;  %v2037_v1 = vsel %vm2031_vm4, %v2004_v29, %v3912_v14  ;;  %v5427_v14 = vld [vmem:[#allocation61_spill] sm:$0xff] }
 0x15e   : > { %v2233_v16 = vsel %vm5308_vm12, %v2200_v2, %v1910_v17  ;;  %v983_v17 = vsel %vm4207_vm5, %v4262_v22, 0.0 }
 0x15f   : > { %1803 = vrot.lane.b32.xlu1 %v5309_v32, %s3203_s30  ;;  %3004 = vmatmul.mubr.msk.f32.gmra.mrb[2].mxu0 %vm2267_vm6, %v2233_v16  ;;  %v417_v16 = vand.u32 15, %v273_v13  ;;  %v3110_v13 = vld [vmem:[#allocation2 + $0xa1] sm:$0xff] }
 0x160   : > { %1805 = vrot.lane.b32.xlu0 %v5313_v60, %s3203_s30 }
 0x161   : > { %v1686_v59 = vpop.permute.xlu1 %1685  ;;  %v1434_v53 = vpop.permute.xlu0 %1433 }
 0x162   : > { %v2168_v10 = vsel %vm2163_vm9, %v2135_v57, %v1686_v59 }
 0x163   : > { %1453 = vrot.lane.b32.xlu1 %v5309_v32, %s3200_s5  ;;  %v2070_v32 = vsel %vm5320_vm11, %v2037_v1, %v4058_v7  ;;  %vm5329_vm11 = vcmask 31744   ;;  %v5334_v1 = vld [vmem:[#allocation32_spill] sm:$0xff] }
 0x164   : > { %1455 = vrot.lane.b32.xlu0 %v5313_v60, %s3200_s5  ;;  %v2103_v19 = vsel %vm5321_vm2, %v2070_v32, %v1432_v20  ;;  %v4286_v60 = vld [vmem:[#allocation2 + $0xa8] sm:$0xff] }
 0x165   : > { %v1784_v50 = vpop.permute.xlu1 %1783  ;;  %v1912_v51 = vpop.permute.xlu0 %1911  ;;  %v2136_v59 = vsel %vm2130_vm7, %v2103_v19, %v1560_v11 }
 0x166   : > { %v2201_v26 = vsel %vm5316_vm3, %v2168_v10, %v1784_v50  ;;  %vm4280_vm3 = vcmp.gt.s32.totalorder %v417_v16, 0  ;;  %v2169_v20 = vsel %vm2163_vm9, %v2136_v59, %v1688_v49  ;;  %v5328_v50 = vld [vmem:[#allocation29_spill] sm:$0xff] }
 0x167   : > { %1931 = vrot.lane.b32.xlu1 %v5318_v58, %s3204_s6  ;;  %v2234_v38 = vsel %vm5308_vm12, %v2201_v26, %v1912_v51  ;;  %v915_v54 = vsel %vm4280_vm3, %v4262_v22, 0.0  ;;  %vm5326_vm12 = vcmask 228352   ;;  %v2005_v26 = vsel %vm5329_vm11, %v773_v47, %v5328_v50  ;;  %v4335_v47 = vld [vmem:[#allocation2 + $0xb0] sm:$0xff] }
 0x168   : > { %1933 = vrot.lane.b32.xlu0 %v1018_v21, %s3204_s6  ;;  %3006 = vmatprep.mubr.msk.f32.mxu0 %vm2267_vm6, %v2234_v38  ;;  %v2038_v37 = vsel %vm2031_vm4, %v2005_v26, %v3908_v0  ;;  %v213_v38 = vld [vmem:[%s3288_s28 + $0xf8] sm:$0xff]  ;;  %v3111_v0 = vld [vmem:[#allocation2 + $0xa9] sm:$0xff]  ;;  %v3112_v26 = vld [vmem:[#allocation2 + $0x40] sm:$0xff] }
 0x169   : > { %v1786_v2 = vpop.permute.xlu1 %1785  ;;  %v1562_v23 = vpop.permute.xlu0 %1561  ;;  %v2071_v61 = vsel %vm5330_vm15, %v2038_v37, %v4056_v39  ;;  %v775_v37 = vsel %vm3748_vm1, %v3112_v26, 0.0  ;;  %vm5346_vm1 = vcmask 97280   ;;  %v4401_v26 = vld [vmem:[#allocation2 + $0xc0] sm:$0xff] }
 0x16a   : > { %v2202_v57 = vsel %vm5326_vm12, %v2169_v20, %v1786_v2  ;;  %v2104_v21 = vsel %vm5321_vm2, %v2071_v61, %v1434_v53  ;;  %vm5331_vm12 = vmmov %vm5329_vm11  ;;  %vm5333_vm11 = vcmask 261120   ;;  %vm5337_vm2 = vcmask 97280   ;;  %v5338_v20 = vld [vmem:[#allocation16_spill] sm:$0xff] }
 0x16b   : > { %1581 = vrot.lane.b32.xlu1 %v5318_v58, %s3201_s10  ;;  %v2137_v51 = vsel %vm2130_vm7, %v2104_v21, %v1562_v23  ;;  %253 = vst.msk [vmem:[#allocation2 + $0x109] sm:$0xff] %vm5331_vm12, %v213_v38  ;;  %vm5335_vm15 = vmmov %vm5331_vm12  ;;  %v5336_v23 = vld [vmem:[#allocation18_spill] sm:$0xff]  ;;  %vm5339_vm12 = vcmask 130048  }
 0x16c   : > { %1709 = vrot.lane.b32.xlu0 %v983_v17, %s3202_s26  ;;  %v2006_v17 = vsel %vm5335_vm15, %v3758_v56, %v5334_v1  ;;  %v1020_v19 = vsel %vm5323_vm10, %v5336_v23, 0.0 }
 0x16d   : > { %v1436_v43 = vpop.permute.xlu1 %1435  ;;  %v1564_v7 = vpop.permute.xlu0 %1563  ;;  %v2039_v32 = vsel %vm2031_vm4, %v2006_v17, %v3920_v31  ;;  %v985_v31 = vsel %vm4280_vm3, %v4335_v47, 0.0 }
 0x16e   : > { %v2072_v59 = vsel %vm5337_vm2, %v2039_v32, %v4072_v18  ;;  %vm5345_vm2 = vcmask 31744  }
 0x16f   : > { %1583 = vrot.lane.b32.xlu1 %v950_v42, %s3201_s10  ;;  %v275_v42 = vadd.s32 160, %v3375_v41 }
 0x170   : > { %1711 = vrot.lane.b32.xlu0 %v4286_v60, %s3202_s26 }
 0x171   : > { %v1914_v10 = vpop.permute.xlu1 %1913  ;;  %v1692_v49 = vpop.permute.xlu0 %1691  ;;  %v431_v8 = vand.u32 15, %v275_v42  ;;  %v3114_v42 = vld [vmem:[#allocation2 + $0xb9] sm:$0xff] }
 0x172   : > { %v2235_v11 = vsel %vm5327_vm8, %v2202_v57, %v1914_v10  ;;  %vm5332_vm8 = vcmask 228352  }
 0x173   : > { %1359 = vrot.lane.b32.xlu1 %v915_v54, %s3199_s4  ;;  %3007 = vmatmul.mubr.msk.f32.gmra.mrb[4].mxu0 %vm2267_vm6, %v2235_v11  ;;  %v2105_v54 = vsel %vm5339_vm12, %v2072_v59, %v1436_v43  ;;  %v5340_v43 = vld [vmem:[#allocation14_spill] sm:$0xff]  ;;  %vm4353_vm15 = vcmp.gt.s32.totalorder %v431_v8, 0 }
 0x174   : > { %1361 = vrot.lane.b32.xlu0 %v4286_v60, %s3199_s4  ;;  %v2138_v10 = vsel %vm2130_vm7, %v2105_v54, %v1564_v7  ;;  %vm5341_vm10 = vnez %v5340_v43  ;;  %v917_v38 = vsel %vm4353_vm15, %v4335_v47, 0.0 }
 0x175   : > { %v1690_v28 = vpop.permute.xlu1 %1689  ;;  %v1438_v58 = vpop.permute.xlu0 %1437  ;;  %v2171_v11 = vsel %vm2163_vm9, %v2138_v10, %v1692_v49  ;;  %v952_v50 = vsel %vm5341_vm10, %v5336_v23, 0.0  ;;  %v277_v10 = vadd.s32 176, %v3375_v41 }
 0x176   : > { %v2170_v62 = vsel %vm2163_vm9, %v2137_v51, %v1690_v28  ;;  %v4361_v51 = vld [vmem:[#allocation2 + $0xb8] sm:$0xff] }
 0x177   : > { %1807 = vrot.lane.b32.xlu1 %v3110_v13, %s3203_s30 }
 0x178   : > { %1809 = vrot.lane.b32.xlu0 %v3111_v0, %s3203_s30 }
 0x179   : > { %v1788_v29 = vpop.permute.xlu1 %1787  ;;  %v1916_v39 = vpop.permute.xlu0 %1915 }
 0x17a   : > { %v2203_v2 = vsel %vm5332_vm8, %v2170_v62, %v1788_v29 }
 0x17b   : > { %1457 = vrot.lane.b32.xlu1 %v3110_v13, %s3200_s5  ;;  %v2236_v53 = vsel %vm5333_vm11, %v2203_v2, %v1916_v39  ;;  %v5344_v13 = vld [vmem:[#allocation31_spill] sm:$0xff] }
 0x17c   : > { %1459 = vrot.lane.b32.xlu0 %v3111_v0, %s3200_s5  ;;  %3009 = vmatprep.mubr.msk.f32.mxu0 %vm2267_vm6, %v2236_v53  ;;  %v2007_v44 = vsel %vm5345_vm2, %v775_v37, %v5344_v13 }
 0x17d   : > { %v1790_v16 = vpop.permute.xlu1 %1789  ;;  %v1566_v56 = vpop.permute.xlu0 %1565  ;;  %v2040_v62 = vsel %vm2031_vm4, %v2007_v44, %v3916_v36 }
 0x17e   : > { %v2204_v28 = vsel %vm5332_vm8, %v2171_v11, %v1790_v16  ;;  %v2073_v0 = vsel %vm5346_vm1, %v2040_v62, %v4067_v45  ;;  %v3113_v16 = vld [vmem:[#allocation2 + $0xb1] sm:$0xff]  ;;  %v777_v62 = vsel %vm3767_vm14, %v3752_v63, 0.0  ;;  %vm5358_vm14 = vcmask 97280  }
 0x17f   : > { %1935 = vrot.lane.b32.xlu1 %v5338_v20, %s3204_s6  ;;  %v2106_v2 = vsel %vm5339_vm12, %v2073_v0, %v1438_v58  ;;  %v5347_v58 = vld [vmem:[#allocation35_spill] sm:$0xff] }
 0x180   : > { %1937 = vrot.lane.b32.xlu0 %v1020_v19, %s3204_s6  ;;  %v2139_v53 = vsel %vm2130_vm7, %v2106_v2, %v1566_v56  ;;  %v2008_v23 = vsel %vm5345_vm2, %v3776_v5, %v5347_v58  ;;  %v5348_v5 = vld [vmem:[#allocation21_spill] sm:$0xff] }
 0x181   : > { %v1440_v57 = vpop.permute.xlu1 %1439  ;;  %v1568_v18 = vpop.permute.xlu0 %1567  ;;  %v2041_v59 = vsel %vm2031_vm4, %v2008_v23, %v3931_v35  ;;  %v1022_v8 = vsel %vm5341_vm10, %v5348_v5, 0.0  ;;  %v5349_v35 = vld [vmem:[#allocation19_spill] sm:$0xff] }
 0x183   : > { %1585 = vrot.lane.b32.xlu1 %v5338_v20, %s3201_s10  ;;  %v2074_v20 = vsel %vm5346_vm1, %v2041_v59, %v4083_v6  ;;  %vm5355_vm1 = vcmask 31744  }
 0x184   : > { %1713 = vrot.lane.b32.xlu0 %v985_v31, %s3202_s26  ;;  %v2107_v54 = vsel %vm5339_vm12, %v2074_v20, %v1440_v57  ;;  %vm5357_vm12 = vmmov %vm5355_vm1  ;;  %v3116_v20 = vld [vmem:[#allocation2 + $0xc9] sm:$0xff] }
 0x185   : > { %v1918_v61 = vpop.permute.xlu1 %1917  ;;  %v1696_v49 = vpop.permute.xlu0 %1695  ;;  %v2140_v11 = vsel %vm2130_vm7, %v2107_v54, %v1568_v18  ;;  %v445_v18 = vand.u32 15, %v277_v10  ;;  %v3117_v10 = vld [vmem:[#allocation2 + $0xca] sm:$0xff] }
 0x186   : > { %v2237_v7 = vsel %vm5333_vm11, %v2204_v28, %v1918_v61  ;;  %v987_v28 = vsel %vm4353_vm15, %v4401_v26, 0.0 }
 0x187   : > { %1587 = vrot.lane.b32.xlu1 %v952_v50, %s3201_s10  ;;  %3010 = vmatmul.mubr.msk.f32.gmra.mrb[6].mxu0 %vm2267_vm6, %v2237_v7  ;;  %v2173_v50 = vsel %vm2163_vm9, %v2140_v11, %v1696_v49  ;;  %v5350_v7 = vld [vmem:[#allocation17_spill] sm:$0xff]  ;;  %vm4416_vm2 = vcmp.gt.s32.totalorder %v445_v18, 0 }
 0x188   : > { %1715 = vrot.lane.b32.xlu0 %v4361_v51, %s3202_s26  ;;  %vm5351_vm10 = vnez %v5350_v7  ;;  %v919_v0 = vsel %vm4416_vm2, %v4401_v26, 0.0 }
 0x189   : > { %v1694_v29 = vpop.permute.xlu1 %1693  ;;  %v1442_v39 = vpop.permute.xlu0 %1441  ;;  %v954_v49 = vsel %vm5351_vm10, %v5348_v5, 0.0  ;;  %v1024_v11 = vsel %vm5351_vm10, %v3117_v10, 0.0 }
 0x18a   : > { %v2172_v1 = vsel %vm2163_vm9, %v2139_v53, %v1694_v29  ;;  %v4426_v29 = vld [vmem:[#allocation2 + $0xc8] sm:$0xff] }
 0x18b   : > { %1363 = vrot.lane.b32.xlu1 %v917_v38, %s3199_s4  ;;  %v5354_v53 = vld [vmem:[#allocation34_spill] sm:$0xff] }
 0x18c   : > { %1365 = vrot.lane.b32.xlu0 %v4361_v51, %s3199_s4 }
 0x18d   : > { %v1792_v17 = vpop.permute.xlu1 %1791  ;;  %v1920_v32 = vpop.permute.xlu0 %1919 }
 0x18e   : > { %v2205_v36 = vsel %vm5332_vm8, %v2172_v1, %v1792_v17  ;;  %v2009_v1 = vsel %vm5355_vm1, %v777_v62, %v5354_v53  ;;  %v5356_v17 = vld [vmem:[#allocation37_spill] sm:$0xff] }
 0x18f   : > { %1811 = vrot.lane.b32.xlu1 %v3113_v16, %s3203_s30  ;;  %v2238_v45 = vsel %vm5333_vm11, %v2205_v36, %v1920_v32  ;;  %v2010_v36 = vsel %vm5357_vm12, %v3794_v4, %v5356_v17  ;;  %v2042_v48 = vsel %vm2031_vm4, %v2009_v1, %v3927_v30  ;;  %v3115_v30 = vld [vmem:[#allocation2 + $0xc1] sm:$0xff]  ;;  %vm5362_vm12 = vcmask 228352  }
 0x190   : > { %1813 = vrot.lane.b32.xlu0 %v3114_v42, %s3203_s30  ;;  %3012 = vmatprep.mubr.msk.f32.mxu0 %vm2267_vm6, %v2238_v45  ;;  %v2075_v32 = vsel %vm5358_vm14, %v2042_v48, %v4076_v24  ;;  %v5370_v1 = vld [vmem:[#allocation36_spill] sm:$0xff]  ;;  %v5374_v48 = vld [vmem:[#allocation77_spill] sm:$0xff] }
 0x191   : > { %v1794_v19 = vpop.permute.xlu1 %1793  ;;  %v1570_v56 = vpop.permute.xlu0 %1569 }
 0x192   : > { %v2206_v57 = vsel %vm5332_vm8, %v2173_v50, %v1794_v19  ;;  %vm5359_vm8 = vmmov %vm5358_vm14  ;;  %vm5363_vm14 = vcmask 261120  }
 0x193   : > { %1461 = vrot.lane.b32.xlu1 %v3113_v16, %s3200_s5  ;;  %v2043_v16 = vsel %vm2031_vm4, %v2010_v36, %v3941_v12 }
 0x194   : > { %1463 = vrot.lane.b32.xlu0 %v3114_v42, %s3200_s5  ;;  %v2076_v45 = vsel %vm5359_vm8, %v2043_v16, %v4090_v34  ;;  %vm5364_vm8 = vmmov %vm5362_vm12 }
 0x195   : > { %v1444_v31 = vpop.permute.xlu1 %1443  ;;  %v1572_v6 = vpop.permute.xlu0 %1571 }
 0x197   : > { %1939 = vrot.lane.b32.xlu1 %v5349_v35, %s3204_s6 }
 0x198   : > { %1941 = vrot.lane.b32.xlu0 %v1022_v8, %s3204_s6 }
 0x199   : > { %v1922_v37 = vpop.permute.xlu1 %1921  ;;  %v1700_v61 = vpop.permute.xlu0 %1699 }
 0x19a   : > { %v2239_v43 = vsel %vm5333_vm11, %v2206_v57, %v1922_v37  ;;  %vm5360_vm11 = vcmask 130048   ;;  %v4469_v57 = vld [vmem:[#allocation2 + $0xd0] sm:$0xff] }
 0x19b   : > { %1589 = vrot.lane.b32.xlu1 %v5349_v35, %s3201_s10  ;;  %3013 = vmatmul.mubr.msk.f32.gmra.mrb[8].mxu0 %vm2267_vm6, %v2239_v43  ;;  %v2108_v4 = vsel %vm5360_vm11, %v2075_v32, %v1442_v39  ;;  %vm5361_vm1 = vmmov %vm5360_vm11  ;;  %v279_v35 = vadd.s32 192, %v3375_v41  ;;  %v989_v43 = vsel %vm4416_vm2, %v4469_v57, 0.0 }
 0x19c   : > { %1717 = vrot.lane.b32.xlu0 %v987_v28, %s3202_s26  ;;  %v2109_v23 = vsel %vm5361_vm1, %v2076_v45, %v1444_v31  ;;  %v2141_v19 = vsel %vm2130_vm7, %v2108_v4, %v1570_v56  ;;  %vm5365_vm11 = vmmov %vm5363_vm14  ;;  %v5376_v45 = vld [vmem:[#allocation58_spill] sm:$0xff] }
 0x19d   : > { %v1698_v13 = vpop.permute.xlu1 %1697  ;;  %v4421_v38 = vpop.permute.xlu0 %1349  ;;  %v2142_v24 = vsel %vm2130_vm7, %v2109_v23, %v1572_v6  ;;  %v3118_v6 = vld [vmem:[#allocation2 + $0xc2] sm:$0xff]  ;;  %v459_v28 = vand.u32 15, %v279_v35  ;;  %v3122_v35 = vld [vmem:[#allocation2 + $0xd2] sm:$0xff] }
 0x19e   : > { %v2174_v42 = vsel %vm2163_vm9, %v2141_v19, %v1698_v13  ;;  %v2175_v39 = vsel %vm2163_vm9, %v2142_v24, %v1700_v61  ;;  %v5366_v61 = vld [vmem:[#allocation20_spill] sm:$0xff]  ;;  %v779_v13 = vsel %vm3785_vm13, %v3771_v52, 0.0  ;;  %v3119_v24 = vld [vmem:[#allocation2 + $0xd1] sm:$0xff] }
 0x19f   : > { %1591 = vrot.lane.b32.xlu1 %v954_v49, %s3201_s10  ;;  %vm5367_vm10 = vnez %v5366_v61  ;;  %vm4484_vm1 = vcmp.gt.s32.totalorder %v459_v28, 0  ;;  %v5384_v61 = vld [vmem:[#allocation22_spill] sm:$0xff] }
 0x1a0   : > { %1719 = vrot.lane.b32.xlu0 %v4426_v29, %s3202_s26  ;;  %v956_v7 = vsel %vm5367_vm10, %v3117_v10, 0.0  ;;  %v921_v53 = vsel %vm4484_vm1, %v4469_v57, 0.0 }
 0x1a1   : > { %v1796_v2 = vpop.permute.xlu1 %1795  ;;  %v1798_v63 = vpop.permute.xlu0 %1797 }
 0x1a2   : > { %v2207_v34 = vsel %vm5362_vm12, %v2174_v42, %v1796_v2  ;;  %v2208_v56 = vsel %vm5364_vm8, %v2175_v39, %v1798_v63  ;;  %v4491_v2 = vld [vmem:[#allocation2 + $0xd8] sm:$0xff]  ;;  %vm5371_vm12 = vcmask 31744   ;;  %vm5377_vm8 = vcmask 130048  }
 0x1a3   : > { %1367 = vrot.lane.b32.xlu1 %v919_v0, %s3199_s4  ;;  %v2011_v17 = vsel %vm5371_vm12, %v779_v13, %v5370_v1  ;;  %vm5373_vm13 = vmmov %vm5371_vm12 }
 0x1a4   : > { %1369 = vrot.lane.b32.xlu0 %v4426_v29, %s3199_s4  ;;  %v2044_v52 = vsel %vm2031_vm4, %v2011_v17, %v3934_v9  ;;  %v2012_v63 = vsel %vm5373_vm13, %v3806_v55, %v5372_v3  ;;  %vm5379_vm12 = vmmov %vm5377_vm8  ;;  %vm5380_vm13 = vcmask 228352  }
 0x1a5   : > { %v1446_v58 = vpop.permute.xlu1 %1445  ;;  %v1448_v12 = vpop.permute.xlu0 %1447  ;;  %v2045_v4 = vsel %vm2031_vm4, %v2012_v63, %v5376_v45  ;;  %v5388_v63 = vld [vmem:[#allocation38_spill] sm:$0xff]  ;;  %v5391_v45 = vld [vmem:[#allocation41_spill] sm:$0xff] }
 0x1a7   : > { %1815 = vrot.lane.b32.xlu1 %v3115_v30, %s3203_s30 }
 0x1a8   : > { %1817 = vrot.lane.b32.xlu0 %v3116_v20, %s3203_s30 }
 0x1a9   : > { %v1924_v59 = vpop.permute.xlu1 %1923  ;;  %v1926_v31 = vpop.permute.xlu0 %1925 }
 0x1aa   : > { %v2240_v54 = vsel %vm5363_vm14, %v2207_v34, %v1924_v59  ;;  %v2241_v5 = vsel %vm5365_vm11, %v2208_v56, %v1926_v31  ;;  %vm5375_vm14 = vcmask 97280  }
 0x1ab   : > { %1465 = vrot.lane.b32.xlu1 %v3115_v30, %s3200_s5  ;;  %3015 = vmatprep.mubr.msk.f32.mxu0 %vm2267_vm6, %v2240_v54  ;;  %v2077_v16 = vsel %vm5375_vm14, %v2044_v52, %v5374_v48  ;;  %vm5378_vm11 = vmmov %vm5375_vm14  ;;  %vm5381_vm14 = vcmask 261120   ;;  %v4555_v52 = vld [vmem:[#allocation2 + $0xe8] sm:$0xff] }
 0x1ac   : > { %1467 = vrot.lane.b32.xlu0 %v3116_v20, %s3200_s5  ;;  %3016 = vmatmul.mubr.msk.f32.gmra.mrb[10].mxu0 %vm2267_vm6, %v2241_v5  ;;  %v2110_v23 = vsel %vm5377_vm8, %v2077_v16, %v1446_v58  ;;  %v2078_v19 = vsel %vm5378_vm11, %v2045_v4, %v4421_v38  ;;  %v3120_v38 = vld [vmem:[#allocation2 + $0xd9] sm:$0xff]  ;;  %vm5382_vm8 = vmmov %vm5380_vm13 }
 0x1ad   : > { %v1574_v8 = vpop.permute.xlu1 %1573  ;;  %v1702_v50 = vpop.permute.xlu0 %1701  ;;  %v2111_v55 = vsel %vm5379_vm12, %v2078_v19, %v1448_v12  ;;  %vm5383_vm11 = vmmov %vm5381_vm14  ;;  %v5392_v4 = vld [vmem:[#allocation76_spill] sm:$0xff] }
 0x1ae   : > { %v2143_v9 = vsel %vm2130_vm7, %v2110_v23, %v1574_v8  ;;  %v3121_v8 = vld [vmem:[#allocation2 + $0xda] sm:$0xff] }
 0x1af   : > { %1943 = vrot.lane.b32.xlu1 %v3118_v6, %s3204_s6  ;;  %v2176_v59 = vsel %vm2163_vm9, %v2143_v9, %v1702_v50  ;;  %v1026_v10 = vsel %vm5367_vm10, %v3121_v8, 0.0  ;;  %v4534_v50 = vld [vmem:[#allocation2 + $0xe0] sm:$0xff]  ;;  %vm5385_vm10 = vnez %v5384_v61 }
 0x1b0   : > { %1945 = vrot.lane.b32.xlu0 %v1024_v11, %s3204_s6  ;;  %v281_v11 = vadd.s32 208, %v3375_v41 }
 0x1b1   : > { %v1576_v37 = vpop.permute.xlu1 %1575  ;;  %v1704_v18 = vpop.permute.xlu0 %1703 }
 0x1b2   : > { %v2144_v42 = vsel %vm2130_vm7, %v2111_v55, %v1576_v37  ;;  %v473_v28 = vand.u32 15, %v281_v11  ;;  %v5395_v55 = vld [vmem:[#allocation60_spill] sm:$0xff] }
 0x1b3   : > { %1593 = vrot.lane.b32.xlu1 %v3118_v6, %s3201_s10  ;;  %v2177_v39 = vsel %vm2163_vm9, %v2144_v42, %v1704_v18 }
 0x1b4   : > { %1721 = vrot.lane.b32.xlu0 %v989_v43, %s3202_s26  ;;  %v991_v43 = vsel %vm4484_vm1, %v4534_v50, 0.0  ;;  %vm4548_vm12 = vcmp.gt.s32.totalorder %v473_v28, 0 }
 0x1b5   : > { %v4478_v49 = vpop.permute.xlu1 %1351  ;;  %v4489_v0 = vpop.permute.xlu0 %1353  ;;  %v923_v3 = vsel %vm4548_vm12, %v4534_v50, 0.0 }
 0x1b7   : > { %1595 = vrot.lane.b32.xlu1 %v956_v7, %s3201_s10  ;;  %v958_v7 = vsel %vm5385_vm10, %v3121_v8, 0.0 }
 0x1b8   : > { %1723 = vrot.lane.b32.xlu0 %v4491_v2, %s3202_s26 }
 0x1b9   : > { %v1800_v36 = vpop.permute.xlu1 %1799  ;;  %v1802_v32 = vpop.permute.xlu0 %1801 }
 0x1ba   : > { %v2209_v58 = vsel %vm5380_vm13, %v2176_v59, %v1800_v36  ;;  %v2210_v12 = vsel %vm5382_vm8, %v2177_v39, %v1802_v32  ;;  %vm5389_vm13 = vcmask 31744   ;;  %vm5396_vm8 = vcmask 130048   ;;  %v3124_v39 = vld [vmem:[#allocation2 + $0xe1] sm:$0xff] }
 0x1bb   : > { %1371 = vrot.lane.b32.xlu1 %v921_v53, %s3199_s4  ;;  %v3123_v53 = vld [vmem:[#allocation2 + $0x70] sm:$0xff] }
 0x1bc   : > { %1373 = vrot.lane.b32.xlu0 %v4491_v2, %s3199_s4  ;;  %v781_v1 = vsel %vm4131_vm0, %v3123_v53, 0.0  ;;  %vm5393_vm0 = vmmov %vm5389_vm13 }
 0x1bd   : > { %v1450_v30 = vpop.permute.xlu1 %1449  ;;  %v2013_v48 = vsel %vm5389_vm13, %v781_v1, %v5388_v63  ;;  %v2014_v23 = vsel %vm5393_vm0, %v5392_v4, %v5391_v45  ;;  %vm5398_vm13 = vmmov %vm5396_vm8  ;;  %vm5399_vm0 = vcmask 228352   ;;  %v4620_v45 = vld [vmem:[#allocation2 + $0xf8] sm:$0xff] }
 0x1be   : > { %v1452_v34 = vpop.permute.xlu0 %1451  ;;  %v2046_v32 = vsel %vm2031_vm4, %v2013_v48, %v5390_v40  ;;  %v2047_v42 = vsel %vm2031_vm4, %v2014_v23, %v5395_v55  ;;  %v5407_v23 = vld [vmem:[#allocation40_spill] sm:$0xff]  ;;  %v5410_v55 = vld [vmem:[#allocation43_spill] sm:$0xff] }
 0x1bf   : > { %1819 = vrot.lane.b32.xlu1 %v3119_v24, %s3203_s30 }
 0x1c0   : > { %1821 = vrot.lane.b32.xlu0 %v3120_v38, %s3203_s30 }
 0x1c1   : > { %v1928_v20 = vpop.permute.xlu1 %1927 }
 0x1c2   : > { %v2242_v54 = vsel %vm5381_vm14, %v2209_v58, %v1928_v20  ;;  %v1930_v56 = vpop.permute.xlu0 %1929  ;;  %vm5394_vm14 = vcmask 97280  }
 0x1c3   : > { %1469 = vrot.lane.b32.xlu1 %v3119_v24, %s3200_s5  ;;  %3018 = vmatprep.mubr.msk.f32.mxu0 %vm2267_vm6, %v2242_v54  ;;  %v2243_v31 = vsel %vm5383_vm11, %v2210_v12, %v1930_v56  ;;  %v2079_v19 = vsel %vm5394_vm14, %v2046_v32, %v4478_v49  ;;  %vm5397_vm11 = vmmov %vm5394_vm14  ;;  %vm5400_vm14 = vcmask 261120  }
 0x1c4   : > { %1471 = vrot.lane.b32.xlu0 %v3120_v38, %s3200_s5  ;;  %3019 = vmatmul.mubr.msk.f32.gmra.mrb[12].mxu0 %vm2267_vm6, %v2243_v31  ;;  %v2112_v24 = vsel %vm5396_vm8, %v2079_v19, %v1450_v30  ;;  %v2080_v59 = vsel %vm5397_vm11, %v2047_v42, %v4489_v0  ;;  %v3125_v0 = vld [vmem:[#allocation2 + $0xe9] sm:$0xff]  ;;  %vm5401_vm8 = vmmov %vm5399_vm0 }
 0x1c5   : > { %v1578_v5 = vpop.permute.xlu1 %1577  ;;  %v2113_v38 = vsel %vm5398_vm13, %v2080_v59, %v1452_v34  ;;  %vm5402_vm11 = vmmov %vm5400_vm14 }
 0x1c6   : > { %v1706_v6 = vpop.permute.xlu0 %1705  ;;  %v2145_v58 = vsel %vm2130_vm7, %v2112_v24, %v1578_v5 }
 0x1c7   : > { %1947 = vrot.lane.b32.xlu1 %v3122_v35, %s3204_s6  ;;  %v2178_v12 = vsel %vm2163_vm9, %v2145_v58, %v1706_v6  ;;  %v5413_v58 = vld [vmem:[#allocation62_spill] sm:$0xff] }
 0x1c8   : > { %1949 = vrot.lane.b32.xlu0 %v1026_v10, %s3204_s6 }
 0x1c9   : > { %v1580_v37 = vpop.permute.xlu1 %1579 }
 0x1ca   : > { %v1708_v18 = vpop.permute.xlu0 %1707  ;;  %v2146_v49 = vsel %vm2130_vm7, %v2113_v38, %v1580_v37  ;;  %v283_v37 = vadd.s32 224, %v3375_v41 }
 0x1cb   : > { %1597 = vrot.lane.b32.xlu1 %v3122_v35, %s3201_s10  ;;  %v2179_v31 = vsel %vm2163_vm9, %v2146_v49, %v1708_v18  ;;  %v3126_v35 = vld [vmem:[#allocation2 + $0xea] sm:$0xff] }
 0x1cc   : > { %1725 = vrot.lane.b32.xlu0 %v991_v43, %s3202_s26  ;;  %v1028_v6 = vsel %vm5385_vm10, %v3126_v35, 0.0  ;;  %v3127_v43 = vld [vmem:[#allocation2 + $0xe2] sm:$0xff]  ;;  %v4598_v18 = vld [vmem:[#allocation2 + $0xf0] sm:$0xff]  ;;  %v487_v1 = vand.u32 15, %v283_v37 }
 0x1cd   : > { %v4543_v13 = vpop.permute.xlu1 %1355  ;;  %v993_v53 = vsel %vm4548_vm12, %v4598_v18, 0.0 }
 0x1ce   : > { %v4553_v36 = vpop.permute.xlu0 %1357  ;;  %vm4613_vm13 = vcmp.gt.s32.totalorder %v487_v1, 0 }
 0x1cf   : > { %1599 = vrot.lane.b32.xlu1 %v958_v7, %s3201_s10  ;;  %v925_v4 = vsel %vm4613_vm13, %v4598_v18, 0.0 }
 0x1d0   : > { %1727 = vrot.lane.b32.xlu0 %v4555_v52, %s3202_s26 }
 0x1d1   : > { %v1804_v16 = vpop.permute.xlu1 %1803 }
 0x1d2   : > { %v1806_v9 = vpop.permute.xlu0 %1805  ;;  %v2211_v30 = vsel %vm5399_vm0, %v2178_v12, %v1804_v16  ;;  %v783_v16 = vsel %vm4207_vm5, %v4112_v15, 0.0  ;;  %vm5408_vm0 = vcmask 31744   ;;  %v5409_v15 = vld [vmem:[#allocation59_spill] sm:$0xff] }
 0x1d3   : > { %1375 = vrot.lane.b32.xlu1 %v923_v3, %s3199_s4  ;;  %v2212_v34 = vsel %vm5401_vm8, %v2179_v31, %v1806_v9  ;;  %v5403_v3 = vld [vmem:[#allocation23_spill] sm:$0xff]  ;;  %v2015_v19 = vsel %vm5408_vm0, %v783_v16, %v5407_v23  ;;  %vm5411_vm5 = vmmov %vm5408_vm0  ;;  %vm5414_vm8 = vcmask 130048  }
 0x1d4   : > { %1377 = vrot.lane.b32.xlu0 %v4555_v52, %s3199_s4  ;;  %vm5404_vm10 = vnez %v5403_v3  ;;  %v2048_v27 = vsel %vm2031_vm4, %v2015_v19, %v5409_v15  ;;  %v2016_v42 = vsel %vm5411_vm5, %v4136_v46, %v5410_v55  ;;  %vm5416_vm0 = vmmov %vm5414_vm8  ;;  %vm5417_vm5 = vcmask 228352   ;;  %v896_v19 = vld [vmem:[#allocation2 + $0x108] sm:$0xff] }
 0x1d5   : > { %v1454_v20 = vpop.permute.xlu1 %1453  ;;  %v960_v63 = vsel %vm5404_vm10, %v3126_v35, 0.0  ;;  %v2049_v38 = vsel %vm2031_vm4, %v2016_v42, %v5413_v58  ;;  %v5425_v55 = vld [vmem:[#allocation42_spill] sm:$0xff] }
 0x1d6   : > { %v1456_v54 = vpop.permute.xlu0 %1455 }
 0x1d7   : > { %1823 = vrot.lane.b32.xlu1 %v3124_v39, %s3203_s30 }
 0x1d8   : > { %1825 = vrot.lane.b32.xlu0 %v3125_v0, %s3203_s30 }
 0x1d9   : > { %v1932_v56 = vpop.permute.xlu1 %1931 }
 0x1da   : > { %v2244_v5 = vsel %vm5400_vm14, %v2211_v30, %v1932_v56  ;;  %v1934_v8 = vpop.permute.xlu0 %1933  ;;  %vm5412_vm14 = vcmask 97280   ;;  %v3128_v56 = vld [vmem:[#allocation2 + $0xf1] sm:$0xff] }
 0x1db   : > { %1473 = vrot.lane.b32.xlu1 %v3124_v39, %s3200_s5  ;;  %3021 = vmatprep.mubr.msk.f32.mxu0 %vm2267_vm6, %v2244_v5  ;;  %v2245_v10 = vsel %vm5402_vm11, %v2212_v34, %v1934_v8  ;;  %v2081_v24 = vsel %vm5412_vm14, %v2048_v27, %v4543_v13  ;;  %vm5415_vm11 = vmmov %vm5412_vm14  ;;  %vm5418_vm14 = vcmask 261120  }
 0x1dc   : > { %1475 = vrot.lane.b32.xlu0 %v3125_v0, %s3200_s5  ;;  %3022 = vmatmul.mubr.msk.f32.gmra.mrb[14].mxu0 %vm2267_vm6, %v2245_v10  ;;  %v2114_v49 = vsel %vm5414_vm8, %v2081_v24, %v1454_v20  ;;  %v2082_v39 = vsel %vm5415_vm11, %v2049_v38, %v4553_v36  ;;  %v3129_v36 = vld [vmem:[#allocation2 + $0xf9] sm:$0xff]  ;;  %vm5419_vm8 = vmmov %vm5417_vm5 }
 0x1dd   : > { %v1582_v11 = vpop.permute.xlu1 %1581  ;;  %v2115_v46 = vsel %vm5416_vm0, %v2082_v39, %v1456_v54  ;;  %vm5420_vm11 = vmmov %vm5418_vm14  ;;  %v5431_v39 = vld [vmem:[#allocation64_spill] sm:$0xff] }
 0x1de   : > { %v1710_v28 = vpop.permute.xlu0 %1709  ;;  %v2147_v12 = vsel %vm2130_vm7, %v2114_v49, %v1582_v11 }
 0x1df   : > { %1951 = vrot.lane.b32.xlu1 %v3127_v43, %s3204_s6  ;;  %v2180_v31 = vsel %vm2163_vm9, %v2147_v12, %v1710_v28  ;;  %v3131_v28 = vld [vmem:[#allocation2 + $0xf2] sm:$0xff] }
 0x1e0   : > { %1953 = vrot.lane.b32.xlu0 %v1028_v6, %s3204_s6  ;;  %v3130_v6 = vld [vmem:[#allocation2 + $0xfa] sm:$0xff] }
 0x1e1   : > { %v1584_v7 = vpop.permute.xlu1 %1583  ;;  %v1030_v37 = vsel %vm5404_vm10, %v3130_v6, 0.0 }
 0x1e2   : > { %v1712_v61 = vpop.permute.xlu0 %1711  ;;  %v2148_v13 = vsel %vm2130_vm7, %v2115_v46, %v1584_v7 }
 0x1e3   : > { %1601 = vrot.lane.b32.xlu1 %v3127_v43, %s3201_s10  ;;  %v2181_v34 = vsel %vm2163_vm9, %v2148_v13, %v1712_v61  ;;  %v285_v43 = vadd.s32 240, %v3375_v41  ;;  %v785_v41 = vsel %vm4280_vm3, %v4186_v33, 0.0  ;;  %v929_v13 = vld [vmem:[#allocation2 + $0x101] sm:$0xff] }
 0x1e4   : > { %1729 = vrot.lane.b32.xlu0 %v993_v53, %s3202_s26  ;;  %v895_v53 = vld [vmem:[#allocation2 + $0x100] sm:$0xff] }
 0x1e5   : > { %v4607_v48 = vpop.permute.xlu1 %1359  ;;  %v995_v61 = vsel %vm4613_vm13, %v895_v53, 0.0 }
 0x1e6   : > { %v4618_v32 = vpop.permute.xlu0 %1361 }
 0x1e7   : > { %1603 = vrot.lane.b32.xlu1 %v960_v63, %s3201_s10  ;;  %v501_v63 = vand.u32 15, %v285_v43 }
 0x1e8   : > { %1731 = vrot.lane.b32.xlu0 %v4620_v45, %s3202_s26 }
 0x1e9   : > { %v1808_v9 = vpop.permute.xlu1 %1807  ;;  %vm4675_vm10 = vcmp.gt.s32.totalorder %v501_v63, 0  ;;  %v5439_v63 = vld [vmem:[#allocation28_spill] sm:$0xff] }
 0x1ea   : > { %v1810_v59 = vpop.permute.xlu0 %1809  ;;  %v2213_v20 = vsel %vm5417_vm5, %v2180_v31, %v1808_v9  ;;  %v927_v27 = vsel %vm4675_vm10, %v895_v53, 0.0  ;;  %vm5426_vm5 = vcmask 31744   ;;  %v5503_v9 = vld [vmem:[#allocation73_spill] sm:$0xff] }
 0x1eb   : > { %1379 = vrot.lane.b32.xlu1 %v925_v4, %s3199_s4  ;;  %v2214_v54 = vsel %vm5419_vm8, %v2181_v34, %v1810_v59  ;;  %v5421_v4 = vld [vmem:[#allocation25_spill] sm:$0xff]  ;;  %v2017_v42 = vsel %vm5426_vm5, %v785_v41, %v5425_v55  ;;  %vm5429_vm3 = vmmov %vm5426_vm5  ;;  %vm5432_vm8 = vcmask 130048   ;;  %v999_v41 = vld [vmem:[#allocation2 + $0x111] sm:$0xff] }
 0x1ec   : > { %1381 = vrot.lane.b32.xlu0 %v4620_v45, %s3199_s4  ;;  %vm5422_vm0 = vnez %v5421_v4  ;;  %v2050_v33 = vsel %vm2031_vm4, %v2017_v42, %v5427_v14  ;;  %v5428_v59 = vld [vmem:[#allocation45_spill] sm:$0xff]  ;;  %vm5434_vm5 = vmmov %vm5432_vm8  ;;  %v787_v4 = vsel %vm4353_vm15, %v4262_v22, 0.0  ;;  %v5441_v55 = vld [vmem:[#allocation44_spill] sm:$0xff] }
 0x1ed   : > { %v1458_v30 = vpop.permute.xlu1 %1457  ;;  %v962_v3 = vsel %vm5422_vm0, %v3130_v6, 0.0  ;;  %v2018_v58 = vsel %vm5429_vm3, %v4214_v25, %v5428_v59  ;;  %vm5435_vm3 = vcmask 228352   ;;  %v931_v6 = vld [vmem:[#allocation2 + $0x102] sm:$0xff]  ;;  %v5443_v14 = vld [vmem:[#allocation63_spill] sm:$0xff] }
 0x1ee   : > { %v1460_v0 = vpop.permute.xlu0 %1459  ;;  %v2051_v12 = vsel %vm2031_vm4, %v2018_v58, %v5431_v39  ;;  %v1001_v59 = vld [vmem:[#allocation2 + $0x112] sm:$0xff] }
 0x1ef   : > { %1827 = vrot.lane.b32.xlu1 %v3128_v56, %s3203_s30  ;;  %v5444_v58 = vld [vmem:[#allocation47_spill] sm:$0xff] }
 0x1f0   : > { %1829 = vrot.lane.b32.xlu0 %v3129_v36, %s3203_s30 }
 0x1f1   : > { %v1936_v5 = vpop.permute.xlu1 %1935 }
 0x1f2   : > { %v2246_v8 = vsel %vm5418_vm14, %v2213_v20, %v1936_v5  ;;  %v1938_v10 = vpop.permute.xlu0 %1937  ;;  %vm5430_vm14 = vcmask 97280  }
 0x1f3   : > { %1477 = vrot.lane.b32.xlu1 %v3128_v56, %s3200_s5  ;;  %3024 = vmatprep.mubr.msk.f32.mxu1 %vm2267_vm6, %v2246_v8  ;;  %v2247_v11 = vsel %vm5420_vm11, %v2214_v54, %v1938_v10  ;;  %v2083_v38 = vsel %vm5430_vm14, %v2050_v33, %v4607_v48  ;;  %vm5433_vm11 = vmmov %vm5430_vm14  ;;  %v930_v48 = vld [vmem:[#allocation2 + $0x109] sm:$0xff]  ;;  %vm5436_vm14 = vcmask 261120  }
 0x1f4   : > { %1479 = vrot.lane.b32.xlu0 %v3129_v36, %s3200_s5  ;;  %3025 = vmatmul.mubr.msk.f32.vlgmr.msra.gmra.mrb[0].mxu1 %vm2267_vm6, %v2247_v11  ;;  %v2116_v46 = vsel %vm5432_vm8, %v2083_v38, %v1458_v30  ;;  %v2084_v56 = vsel %vm5433_vm11, %v2051_v12, %v4618_v32  ;;  %vm5437_vm8 = vmmov %vm5435_vm3  ;;  %v932_v11 = vld [vmem:[#allocation2 + $0x10a] sm:$0xff] }
 0x1f5   : > { %v1586_v35 = vpop.permute.xlu1 %1585  ;;  %v2117_v25 = vsel %vm5434_vm5, %v2084_v56, %v1460_v0  ;;  %vm5438_vm11 = vmmov %vm5436_vm14  ;;  %v1032_v43 = vsel %vm5422_vm0, %v932_v11, 0.0  ;;  %vm5440_vm5 = vnez %v5439_v63  ;;  %vm5442_vm0 = vcmask 31744   ;;  %v1002_v56 = vld [vmem:[#allocation2 + $0x11a] sm:$0xff] }
 0x1f6   : > { %v1714_v7 = vpop.permute.xlu0 %1713  ;;  %v2149_v31 = vsel %vm2130_vm7, %v2116_v46, %v1586_v35  ;;  %v2019_v42 = vsel %vm5442_vm0, %v787_v4, %v5441_v55  ;;  %vm5445_vm15 = vmmov %vm5442_vm0  ;;  %v1000_v46 = vld [vmem:[#allocation2 + $0x119] sm:$0xff]  ;;  %vm5451_vm0 = vcmask 228352   ;;  %v5455_v55 = vld [vmem:[#allocation46_spill] sm:$0xff] }
 0x1f7   : > { %1955 = vrot.lane.b32.xlu1 %v3131_v28, %s3204_s6  ;;  %v2182_v34 = vsel %vm2163_vm9, %v2149_v31, %v1714_v7  ;;  %v965_v7 = vld [vmem:[#allocation2 + $0x110] sm:$0xff]  ;;  %v2052_v33 = vsel %vm2031_vm4, %v2019_v42, %v5443_v14  ;;  %v2020_v22 = vsel %vm5445_vm15, %v4286_v60, %v5444_v58  ;;  %vm5452_vm15 = vcmask 261120   ;;  %v5457_v14 = vld [vmem:[#allocation49_spill] sm:$0xff] }
 0x1f8   : > { %1957 = vrot.lane.b32.xlu0 %v1030_v37, %s3204_s6 }
 0x1f9   : > { %v1588_v1 = vpop.permute.xlu1 %1587 }
 0x1fa   : > { %v1716_v16 = vpop.permute.xlu0 %1715  ;;  %v2150_v5 = vsel %vm2130_vm7, %v2117_v25, %v1588_v1  ;;  %v997_v1 = vsel %vm4675_vm10, %v965_v7, 0.0 }
 0x1fb   : > { %1605 = vrot.lane.b32.xlu1 %v3131_v28, %s3201_s10  ;;  %v2183_v32 = vsel %vm2163_vm9, %v2150_v5, %v1716_v16  ;;  %v964_v16 = vsel %vm5440_vm5, %v932_v11, 0.0 }
 0x1fc   : > { %1733 = vrot.lane.b32.xlu0 %v995_v61, %s3202_s26 }
 0x1fd   : > { %v4669_v23 = vpop.permute.xlu1 %1363 }
 0x1fe   : > { %v4680_v15 = vpop.permute.xlu0 %1365 }
 0x1ff   : > { %1607 = vrot.lane.b32.xlu1 %v962_v3, %s3201_s10 }
 0x200   : > { %1735 = vrot.lane.b32.xlu0 %v896_v19, %s3202_s26 }
 0x201   : > { %v1812_v24 = vpop.permute.xlu1 %1811 }
 0x202   : > { %v1814_v49 = vpop.permute.xlu0 %1813  ;;  %v2215_v30 = vsel %vm5435_vm3, %v2182_v34, %v1812_v24  ;;  %vm5446_vm3 = vcmask 97280  }
 0x203   : > { %1383 = vrot.lane.b32.xlu1 %v927_v27, %s3199_s4  ;;  %v2216_v10 = vsel %vm5437_vm8, %v2183_v32, %v1814_v49  ;;  %v966_v27 = vld [vmem:[#allocation2 + $0x118] sm:$0xff]  ;;  %v2085_v21 = vsel %vm5446_vm3, %v2052_v33, %v4669_v23  ;;  %v5447_v49 = vld [vmem:[#allocation66_spill] sm:$0xff]  ;;  %vm5449_vm8 = vmmov %vm5446_vm3 }
 0x204   : > { %1385 = vrot.lane.b32.xlu0 %v896_v19, %s3199_s4  ;;  %v2053_v39 = vsel %vm2031_vm4, %v2020_v22, %v5447_v49  ;;  %vm5453_vm3 = vmmov %vm5451_vm0 }
 0x205   : > { %v1462_v20 = vpop.permute.xlu1 %1461  ;;  %v2086_v60 = vsel %vm5449_vm8, %v2053_v39, %v4680_v15 }
 0x206   : > { %v1464_v36 = vpop.permute.xlu0 %1463 }
 0x207   : > { %1831 = vrot.lane.b32.xlu1 %v929_v13, %s3203_s30 }
 0x208   : > { %1833 = vrot.lane.b32.xlu0 %v930_v48, %s3203_s30 }
 0x209   : > { %v1940_v8 = vpop.permute.xlu1 %1939 }
 0x20a   : > { %v2248_v54 = vsel %vm5436_vm14, %v2215_v30, %v1940_v8  ;;  %v1942_v0 = vpop.permute.xlu0 %1941  ;;  %vm5448_vm14 = vcmask 130048  }
 0x20b   : > { %1481 = vrot.lane.b32.xlu1 %v929_v13, %s3200_s5  ;;  %3027 = vmatprep.mubr.msk.f32.mxu1 %vm2267_vm6, %v2248_v54  ;;  %v2249_v35 = vsel %vm5438_vm11, %v2216_v10, %v1942_v0  ;;  %v2118_v12 = vsel %vm5448_vm14, %v2085_v21, %v1462_v20  ;;  %vm5450_vm11 = vmmov %vm5448_vm14  ;;  %vm5456_vm14 = vcmask 31744   ;;  %v5460_v21 = vld [vmem:[#allocation68_spill] sm:$0xff] }
 0x20c   : > { %1483 = vrot.lane.b32.xlu0 %v930_v48, %s3200_s5  ;;  %3028 = vmatmul.mubr.msk.f32.gmra.mrb[2].mxu1 %vm2267_vm6, %v2249_v35  ;;  %s4753_s5 = scalar_lea.vmem %s5094_s2, %s2951_s25  ;;  %v2119_v31 = vsel %vm5450_vm11, %v2086_v60, %v1464_v36  ;;  %v1034_v36 = vsel %vm5440_vm5, %v1002_v56, 0.0  ;;  %vm5454_vm5 = vmmov %vm5452_vm15  ;;  %vm5461_vm11 = vcmask 97280   ;;  %s2909_s25 = sshll.u32 %s169_s24, 1 }
 0x20d   : > { %v1590_v37 = vpop.permute.xlu1 %1589  ;;  %vm5458_vm8 = vmmov %vm5456_vm14  ;;  %s171_s8 = scalar_lea.vmem [#allocation3], %s2909_s25 }
 0x20e   : > { %v1718_v28 = vpop.permute.xlu0 %1717  ;;  %v2151_v23 = vsel %vm2130_vm7, %v2118_v12, %v1590_v37  ;;  %v2022_v33 = vsel %vm5458_vm8, %v4361_v51, %v5457_v14  ;;  %vm5466_vm8 = vmmov %vm5454_vm5  ;;  %s2821_s9 = sshll.u32 %s171_s8, 4  ;;  %s5052_s9 = int_to_ptr.vmem [resolvable:$true] %s2821_s9 }
 0x20f   : > { %1959 = vrot.lane.b32.xlu1 %v931_v6, %s3204_s6  ;;  %v2184_v30 = vsel %vm2163_vm9, %v2151_v23, %v1718_v28  ;;  %s3132_s16 = scalar_lea.vmem %s5052_s9, 32 }
 0x210   : > { %1961 = vrot.lane.b32.xlu0 %v1032_v43, %s3204_s6  ;;  %p3133_p11 = scmp.ne.s32.totalorder %s5052_s9, %s3132_s16 }
 0x211   : > { %v1592_v53 = vpop.permute.xlu1 %1591 }
 0x212   : > { %v1720_v61 = vpop.permute.xlu0 %1719  ;;  %v2152_v25 = vsel %vm2130_vm7, %v2119_v31, %v1592_v53  ;;  %p3134_p12 = pnand %p3133_p11, %p3264_p5 }
 0x213   : > { %1609 = vrot.lane.b32.xlu1 %v931_v6, %s3201_s10  ;;  %v2185_v35 = vsel %vm2163_vm9, %v2152_v25, %v1720_v61 }
 0x214   : > { %1737 = vrot.lane.b32.xlu0 %v997_v1, %s3202_s26  ;;  %p3135_p13 = pneg %p3134_p12 }
 0x215   : > { %v4725_v3 = vpop.permute.xlu1 %1367 }
 0x216   : > { %v4732_v19 = vpop.permute.xlu0 %1369 }
 0x217   : > { %1611 = vrot.lane.b32.xlu1 %v964_v16, %s3201_s10 }
 0x218   : > { %1835 = vrot.lane.b32.xlu0 %v999_v41, %s3203_s30  ;;  %v789_v41 = vsel %vm4416_vm2, %v4335_v47, 0.0  ;;  %vm5462_vm2 = vcmask 130048  }
 0x219   : > { %v1816_v24 = vpop.permute.xlu1 %1815  ;;  %v2021_v42 = vsel %vm5456_vm14, %v789_v41, %v5455_v55  ;;  %vm5465_vm14 = vmmov %vm5453_vm3  ;;  %v5467_v55 = vld [vmem:[#allocation48_spill] sm:$0xff] }
 0x21a   : > { %v1818_v38 = vpop.permute.xlu0 %1817  ;;  %v2217_v54 = vsel %vm5451_vm0, %v2184_v30, %v1816_v24  ;;  %vm5463_vm0 = vmmov %vm5461_vm11 }
 0x21b   : > { %1739 = vrot.lane.b32.xlu1 %v966_v27, %s3202_s26  ;;  %v2218_v43 = vsel %vm5453_vm3, %v2185_v35, %v1818_v38  ;;  %v2055_v38 = vsel %vm2031_vm4, %v2022_v33, %v5460_v21  ;;  %v5469_v33 = vld [vmem:[#allocation67_spill] sm:$0xff]  ;;  %s3136_s26 = sshll.u32 %s3205_s20, 4  ;;  %s3137_s26 = int_to_ptr.vmem [resolvable:$false] %s3136_s26 }
 0x21c   : > { %1963 = vrot.lane.b32.xlu0 %v1001_v59, %s3204_s6  ;;  %v5459_v59 = vld [vmem:[#allocation65_spill] sm:$0xff]  ;;  %v2088_v60 = vsel %vm5463_vm0, %v2055_v38, %v4732_v19  ;;  %s3138_s27 = scalar_lea.vmem %s3137_s26, 64  ;;  %p3139_p0 = scmp.lt.s32.totalorder %s5052_s9, %s3137_s26 }
 0x21d   : > { %v1466_v13 = vpop.permute.xlu1 %1465  ;;  %v2054_v58 = vsel %vm2031_vm4, %v2021_v42, %v5459_v59  ;;  %p3140_p1 = scmp.lt.s32.totalorder %s3138_s27, %s3132_s16 }
 0x21e   : > { %v3002_v20 = vpop.f32.mrb[0].mxu0  ;;  %v1468_v15 = vpop.permute.xlu0 %1467  ;;  %v2087_v47 = vsel %vm5461_vm11, %v2054_v58, %v4725_v3  ;;  %vm5468_vm11 = vcmask 31744   ;;  %v5470_v58 = vld [vmem:[#allocation51_spill] sm:$0xff] }
 0x21f   : > { %2594 = vst.msk [vmem:[%s4753_s5 + $0x8] sm:$0xff] %vm2031_vm4, %v3002_v20  ;;  %v2626_v48 = vsel %vm2031_vm4, %v3002_v20, 0.0  ;;  %v2695_v5 = vmul.f32 %v3002_v20, %v3002_v20  ;;  %1837 = vrot.lane.b32.xlu1 %v1000_v46, %s3203_s30  ;;  %v2434_v34 = vpop.f32.mrb[1].mxu0  ;;  %v2120_v39 = vsel %vm5462_vm2, %v2087_v47, %v1466_v13  ;;  %p3141_p2 = por %p3140_p1, %p3139_p0 }
 0x220   : > { %2593 = vst.msk [vmem:[%s4753_s5] sm:$0xff] %vm2031_vm4, %v2434_v34  ;;  %v2625_v8 = vsel %vm2031_vm4, %v2434_v34, 0.0  ;;  %v2694_v32 = vmul.f32 %v2434_v34, %v2434_v34 }
 0x221   : > { %v2727_v10 = vsel %vm2031_vm4, %v2695_v5, 0.0  ;;  %v2627_v0 = vadd.f32 %v2626_v48, %v2625_v8  ;;  %v1944_v11 = vpop.permute.xlu1 %1943  ;;  %p3142_p3 = pnand %p3141_p2, %p3135_p13 }
 0x222   : > { %v2726_v6 = vsel %vm2031_vm4, %v2694_v32, 0.0  ;;  %v2250_v37 = vsel %vm5452_vm15, %v2217_v54, %v1944_v11  ;;  %v1946_v7 = vpop.permute.xlu0 %1945  ;;  %vm5464_vm15 = vmmov %vm5462_vm2 }
 0x223   : > { %v2728_v28 = vadd.f32 %v2727_v10, %v2726_v6  ;;  %1965 = vrot.lane.b32.xlu1 %v1034_v36, %s3204_s6  ;;  %3030 = vmatprep.mubr.msk.f32.mxu1 %vm2267_vm6, %v2250_v37  ;;  %v2251_v53 = vsel %vm5454_vm5, %v2218_v43, %v1946_v7  ;;  %v2121_v3 = vsel %vm5464_vm15, %v2088_v60, %v1468_v15  ;;  %v791_v7 = vsel %vm4484_vm1, %v4401_v26, 0.0  ;;  %vm5471_vm1 = vmmov %vm5468_vm11 }
 0x224   : > { %3031 = vmatmul.mubr.msk.f32.gmra.mrb[4].mxu1 %vm2267_vm6, %v2251_v53  ;;  %v2023_v42 = vsel %vm5468_vm11, %v791_v7, %v5467_v55  ;;  %vm5472_vm2 = vmmov %vm5463_vm0 }
 0x225   : > { %v1594_v1 = vpop.permute.xlu1 %1593  ;;  %v2056_v26 = vsel %vm2031_vm4, %v2023_v42, %v5469_v33  ;;  %vm5474_vm0 = vmmov %vm5464_vm15  ;;  %v5483_v33 = vld [vmem:[#allocation53_spill] sm:$0xff] }
 0x226   : > { %v1722_v63 = vpop.permute.xlu0 %1721  ;;  %v2153_v23 = vsel %vm2130_vm7, %v2120_v39, %v1594_v1  ;;  %vm5475_vm15 = vmmov %vm5472_vm2 }
 0x227   : > { %v2186_v30 = vsel %vm2163_vm9, %v2153_v23, %v1722_v63 }
 0x229   : > { %v1596_v61 = vpop.permute.xlu1 %1595 }
 0x22a   : > { %v1724_v16 = vpop.permute.xlu0 %1723  ;;  %v2154_v13 = vsel %vm2130_vm7, %v2121_v3, %v1596_v61 }
 0x22b   : > { %v2187_v15 = vsel %vm2163_vm9, %v2154_v13, %v1724_v16 }
 0x22d   : > { %v4781_v4 = vpop.permute.xlu1 %1371 }
 0x22e   : > { %v4786_v27 = vpop.permute.xlu0 %1373  ;;  %v2089_v21 = vsel %vm5472_vm2, %v2056_v26, %v4781_v4 }
 0x231   : > { %v1820_v24 = vpop.permute.xlu1 %1819 }
 0x232   : > { %v3005_v22 = vpop.f32.mrb[2].mxu0  ;;  %v1822_v44 = vpop.permute.xlu0 %1821  ;;  %v2219_v19 = vsel %vm5453_vm3, %v2186_v30, %v1820_v24  ;;  %vm5476_vm3 = vmmov %vm5474_vm0 }
 0x233   : > { %2596 = vst.msk [vmem:[%s4753_s5 + $0x18] sm:$0xff] %vm2031_vm4, %v3005_v22  ;;  %v2444_v49 = vpop.f32.mrb[3].mxu0  ;;  %v2697_v12 = vmul.f32 %v3005_v22, %v3005_v22  ;;  %v2630_v20 = vsel %vm2031_vm4, %v3005_v22, 0.0  ;;  %v2220_v10 = vsel %vm5465_vm14, %v2187_v15, %v1822_v44  ;;  %v2024_v22 = vsel %vm5471_vm1, %v4426_v29, %v5470_v58 }
 0x234   : > { %2595 = vst.msk [vmem:[%s4753_s5 + $0x10] sm:$0xff] %vm2031_vm4, %v2444_v49  ;;  %v2628_v51 = vsel %vm2031_vm4, %v2444_v49, 0.0  ;;  %v2696_v46 = vmul.f32 %v2444_v49, %v2444_v49  ;;  %v5473_v49 = vld [vmem:[#allocation70_spill] sm:$0xff] }
 0x235   : > { %v2629_v56 = vadd.f32 %v2628_v51, %v2627_v0  ;;  %v1470_v31 = vpop.permute.xlu1 %1469  ;;  %v2731_v8 = vsel %vm2031_vm4, %v2697_v12, 0.0  ;;  %v2057_v39 = vsel %vm2031_vm4, %v2024_v22, %v5473_v49 }
 0x236   : > { %v2729_v25 = vsel %vm2031_vm4, %v2696_v46, 0.0  ;;  %v1472_v5 = vpop.permute.xlu0 %1471  ;;  %v2122_v12 = vsel %vm5474_vm0, %v2089_v21, %v1470_v31  ;;  %v2090_v46 = vsel %vm5475_vm15, %v2057_v39, %v4786_v27  ;;  %vm5486_vm15 = vmmov %vm5472_vm2 }
 0x237   : > { %v2730_v48 = vadd.f32 %v2729_v25, %v2728_v28  ;;  %v2631_v34 = vadd.f32 %v2630_v20, %v2629_v56  ;;  %v2123_v56 = vsel %vm5476_vm3, %v2090_v46, %v1472_v5  ;;  %vm5487_vm3 = vmmov %vm5474_vm0 }
 0x239   : > { %v1948_v32 = vpop.permute.xlu1 %1947  ;;  %v2732_v36 = vadd.f32 %v2731_v8, %v2730_v48 }
 0x23a   : > { %v2252_v54 = vsel %vm5454_vm5, %v2219_v19, %v1948_v32  ;;  %v1950_v0 = vpop.permute.xlu0 %1949  ;;  %vm5477_vm5 = vmmov %vm5465_vm14 }
 0x23b   : > { %3033 = vmatprep.mubr.msk.f32.mxu1 %vm2267_vm6, %v2252_v54  ;;  %v2253_v11 = vsel %vm5466_vm8, %v2220_v10, %v1950_v0  ;;  %vm5478_vm14 = vmmov %vm5466_vm8 }
 0x23c   : > { %3034 = vmatmul.mubr.msk.f32.gmra.mrb[6].mxu1 %vm2267_vm6, %v2253_v11  ;;  %vm5479_vm8 = vmmov %vm5477_vm5 }
 0x23d   : > { %v1598_v35 = vpop.permute.xlu1 %1597  ;;  %vm5480_vm11 = vmmov %vm5478_vm14 }
 0x23e   : > { %v1726_v6 = vpop.permute.xlu0 %1725  ;;  %v2155_v60 = vsel %vm2130_vm7, %v2122_v12, %v1598_v35 }
 0x23f   : > { %v2188_v20 = vsel %vm2163_vm9, %v2155_v60, %v1726_v6  ;;  %v793_v6 = vsel %vm4548_vm12, %v4469_v57, 0.0  ;;  %vm5484_vm12 = vmmov %vm5471_vm1 }
 0x240   : > { %v2026_v57 = vsel %vm5484_vm12, %v4491_v2, %v5483_v33  ;;  %vm5492_vm12 = vmmov %vm5471_vm1 }
 0x241   : > { %v1600_v37 = vpop.permute.xlu1 %1599 }
 0x242   : > { %v1728_v43 = vpop.permute.xlu0 %1727  ;;  %v2156_v4 = vsel %vm2130_vm7, %v2123_v56, %v1600_v37 }
 0x243   : > { %v2189_v13 = vsel %vm2163_vm9, %v2156_v4, %v1728_v43 }
 0x245   : > { %v4821_v28 = vpop.permute.xlu1 %1375 }
 0x246   : > { %v3008_v53 = vpop.f32.mrb[4].mxu0  ;;  %v4828_v1 = vpop.permute.xlu0 %1377 }
 0x247   : > { %2598 = vst.msk [vmem:[%s4753_s5 + $0x28] sm:$0xff] %vm2031_vm4, %v3008_v53  ;;  %v2454_v63 = vpop.f32.mrb[5].mxu0  ;;  %v2699_v61 = vmul.f32 %v3008_v53, %v3008_v53  ;;  %v2634_v62 = vsel %vm2031_vm4, %v3008_v53, 0.0 }
 0x248   : > { %2597 = vst.msk [vmem:[%s4753_s5 + $0x20] sm:$0xff] %vm2031_vm4, %v2454_v63  ;;  %v2632_v16 = vsel %vm2031_vm4, %v2454_v63, 0.0  ;;  %v2698_v41 = vmul.f32 %v2454_v63, %v2454_v63 }
 0x249   : > { %v2633_v24 = vadd.f32 %v2632_v16, %v2631_v34  ;;  %v1824_v14 = vpop.permute.xlu1 %1823  ;;  %v2735_v51 = vsel %vm2031_vm4, %v2699_v61, 0.0  ;;  %v5481_v16 = vld [vmem:[#allocation50_spill] sm:$0xff] }
 0x24a   : > { %v2733_v59 = vsel %vm2031_vm4, %v2698_v41, 0.0  ;;  %v1826_v47 = vpop.permute.xlu0 %1825  ;;  %v2221_v25 = vsel %vm5477_vm5, %v2188_v20, %v1824_v14  ;;  %v2025_v41 = vsel %vm5471_vm1, %v793_v6, %v5481_v16 }
 0x24b   : > { %v2734_v38 = vadd.f32 %v2733_v59, %v2732_v36  ;;  %v2635_v44 = vadd.f32 %v2634_v62, %v2633_v24  ;;  %v2222_v48 = vsel %vm5479_vm8, %v2189_v13, %v1826_v47  ;;  %v5482_v24 = vld [vmem:[#allocation69_spill] sm:$0xff]  ;;  %v5485_v62 = vld [vmem:[#allocation72_spill] sm:$0xff]  ;;  %vm5489_vm8 = vmmov %vm5477_vm5 }
 0x24c   : > { %v2058_v14 = vsel %vm2031_vm4, %v2025_v41, %v5482_v24  ;;  %v2059_v59 = vsel %vm2031_vm4, %v2026_v57, %v5485_v62 }
 0x24d   : > { %v1474_v23 = vpop.permute.xlu1 %1473  ;;  %v2736_v29 = vadd.f32 %v2735_v51, %v2734_v38  ;;  %v2091_v17 = vsel %vm5472_vm2, %v2058_v14, %v4821_v28  ;;  %v2092_v22 = vsel %vm5486_vm15, %v2059_v59, %v4828_v1  ;;  %vm5496_vm15 = vmmov %vm5474_vm0 }
 0x24e   : > { %v1476_v3 = vpop.permute.xlu0 %1475  ;;  %v2124_v58 = vsel %vm5474_vm0, %v2091_v17, %v1474_v23 }
 0x24f   : > { %v2125_v47 = vsel %vm5487_vm3, %v2092_v22, %v1476_v3  ;;  %vm5497_vm3 = vmmov %vm5477_vm5 }
 0x251   : > { %v1952_v31 = vpop.permute.xlu1 %1951 }
 0x252   : > { %v2254_v27 = vsel %vm5478_vm14, %v2221_v25, %v1952_v31  ;;  %v1954_v34 = vpop.permute.xlu0 %1953  ;;  %vm5488_vm14 = vmmov %vm5480_vm11 }
 0x253   : > { %3036 = vmatprep.mubr.msk.f32.mxu1 %vm2267_vm6, %v2254_v27  ;;  %v2255_v5 = vsel %vm5480_vm11, %v2222_v48, %v1954_v34 }
 0x254   : > { %3037 = vmatmul.mubr.msk.f32.gmra.mrb[8].mxu1 %vm2267_vm6, %v2255_v5 }
 0x255   : > { %v1602_v30 = vpop.permute.xlu1 %1601 }
 0x256   : > { %v1730_v8 = vpop.permute.xlu0 %1729  ;;  %v2157_v21 = vsel %vm2130_vm7, %v2124_v58, %v1602_v30 }
 0x257   : > { %v2190_v28 = vsel %vm2163_vm9, %v2157_v21, %v1730_v8 }
 0x259   : > { %v1604_v19 = vpop.permute.xlu1 %1603 }
 0x25a   : > { %v3011_v32 = vpop.f32.mrb[6].mxu0  ;;  %v1732_v36 = vpop.permute.xlu0 %1731  ;;  %v2158_v2 = vsel %vm2130_vm7, %v2125_v47, %v1604_v19  ;;  %v797_v47 = vsel %vm4675_vm10, %v4598_v18, 0.0  ;;  %vm5504_vm10 = vmmov %vm5472_vm2 }
 0x25b   : > { %2600 = vst.msk [vmem:[%s4753_s5 + $0x38] sm:$0xff] %vm2031_vm4, %v3011_v32  ;;  %v2464_v15 = vpop.f32.mrb[7].mxu0  ;;  %v2701_v54 = vmul.f32 %v3011_v32, %v3011_v32  ;;  %v2638_v37 = vsel %vm2031_vm4, %v3011_v32, 0.0  ;;  %v2191_v12 = vsel %vm2163_vm9, %v2158_v2, %v1732_v36  ;;  %v795_v36 = vsel %vm4613_vm13, %v4534_v50, 0.0  ;;  %vm5495_vm13 = vmmov %vm5472_vm2 }
 0x25c   : > { %2599 = vst.msk [vmem:[%s4753_s5 + $0x30] sm:$0xff] %vm2031_vm4, %v2464_v15  ;;  %v2636_v10 = vsel %vm2031_vm4, %v2464_v15, 0.0  ;;  %v2700_v0 = vmul.f32 %v2464_v15, %v2464_v15 }
 0x25d   : > { %v2637_v11 = vadd.f32 %v2636_v10, %v2635_v44  ;;  %v1380_v35 = vpop.permute.xlu1 %1379  ;;  %v2739_v61 = vsel %vm2031_vm4, %v2701_v54, 0.0  ;;  %v5490_v54 = vld [vmem:[#allocation52_spill] sm:$0xff] }
 0x25e   : > { %v2737_v43 = vsel %vm2031_vm4, %v2700_v0, 0.0  ;;  %v1382_v53 = vpop.permute.xlu0 %1381  ;;  %v2027_v10 = vsel %vm5471_vm1, %v795_v36, %v5490_v54 }
 0x25f   : > { %v2738_v7 = vadd.f32 %v2737_v43, %v2736_v29  ;;  %v2639_v63 = vadd.f32 %v2638_v37, %v2637_v11  ;;  %v5491_v11 = vld [vmem:[#allocation55_spill] sm:$0xff] }
 0x260   : > { %v2028_v6 = vsel %vm5492_vm12, %v4555_v52, %v5491_v11  ;;  %v5493_v37 = vld [vmem:[#allocation71_spill] sm:$0xff] }
 0x261   : > { %v1828_v55 = vpop.permute.xlu1 %1827  ;;  %v2740_v42 = vadd.f32 %v2739_v61, %v2738_v7  ;;  %v2060_v43 = vsel %vm2031_vm4, %v2027_v10, %v5493_v37  ;;  %v5494_v7 = vld [vmem:[#allocation74_spill] sm:$0xff] }
 0x262   : > { %v1830_v26 = vpop.permute.xlu0 %1829  ;;  %v2223_v49 = vsel %vm5477_vm5, %v2190_v28, %v1828_v55  ;;  %v2093_v61 = vsel %vm5472_vm2, %v2060_v43, %v1380_v35  ;;  %vm5498_vm5 = vmmov %vm5480_vm11 }
 0x263   : > { %v2224_v1 = vsel %vm5489_vm8, %v2191_v12, %v1830_v26  ;;  %vm5500_vm8 = vmmov %vm5498_vm5 }
 0x264   : > { %vm5508_vm2 = vmmov %vm5497_vm3 }
 0x265   : > { %v1478_v38 = vpop.permute.xlu1 %1477 }
 0x266   : > { %v1480_v44 = vpop.permute.xlu0 %1479  ;;  %v2126_v16 = vsel %vm5474_vm0, %v2093_v61, %v1478_v38 }
 0x269   : > { %v1956_v39 = vpop.permute.xlu1 %1955 }
 0x26a   : > { %v2256_v51 = vsel %vm5488_vm14, %v2223_v49, %v1956_v39  ;;  %v1958_v46 = vpop.permute.xlu0 %1957  ;;  %vm5499_vm14 = vmmov %vm5497_vm3 }
 0x26b   : > { %3039 = vmatprep.mubr.msk.f32.mxu1 %vm2267_vm6, %v2256_v51  ;;  %v2257_v60 = vsel %vm5480_vm11, %v2224_v1, %v1958_v46  ;;  %v5501_v1 = vld [vmem:[#allocation54_spill] sm:$0xff]  ;;  %vm5502_vm11 = vmmov %vm5471_vm1 }
 0x26c   : > { %3040 = vmatmul.mubr.msk.f32.gmra.mrb[10].mxu1 %vm2267_vm6, %v2257_v60  ;;  %v2029_v46 = vsel %vm5502_vm11, %v797_v47, %v5501_v1  ;;  %vm5505_vm1 = vmmov %vm5474_vm0 }
 0x26d   : > { %v1606_v23 = vpop.permute.xlu1 %1605  ;;  %v2062_v18 = vsel %vm2031_vm4, %v2029_v46, %v5503_v9  ;;  %vm5507_vm12 = vmmov %vm5502_vm11 }
 0x26e   : > { %v3014_v29 = vpop.f32.mrb[8].mxu0  ;;  %v1734_v56 = vpop.permute.xlu0 %1733  ;;  %v2159_v55 = vsel %vm2130_vm7, %v2126_v16, %v1606_v23  ;;  %vm5511_vm0 = vmmov %vm5504_vm10 }
 0x26f   : > { %2602 = vst.msk [vmem:[%s4753_s5 + $0x48] sm:$0xff] %vm2031_vm4, %v3014_v29  ;;  %v2474_v4 = vpop.f32.mrb[9].mxu0  ;;  %v2703_v3 = vmul.f32 %v3014_v29, %v3014_v29  ;;  %v2642_v27 = vsel %vm2031_vm4, %v3014_v29, 0.0  ;;  %v2192_v14 = vsel %vm2163_vm9, %v2159_v55, %v1734_v56 }
 0x270   : > { %2601 = vst.msk [vmem:[%s4753_s5 + $0x40] sm:$0xff] %vm2031_vm4, %v2474_v4  ;;  %v2640_v20 = vsel %vm2031_vm4, %v2474_v4, 0.0  ;;  %v2702_v25 = vmul.f32 %v2474_v4, %v2474_v4 }
 0x271   : > { %v2641_v31 = vadd.f32 %v2640_v20, %v2639_v63  ;;  %v1608_v13 = vpop.permute.xlu1 %1607  ;;  %v2743_v8 = vsel %vm2031_vm4, %v2703_v3, 0.0  ;;  %v2061_v63 = vsel %vm2031_vm4, %v2028_v6, %v5494_v7 }
 0x272   : > { %v2741_v48 = vsel %vm2031_vm4, %v2702_v25, 0.0  ;;  %v1736_v5 = vpop.permute.xlu0 %1735  ;;  %v2094_v50 = vsel %vm5495_vm13, %v2061_v63, %v1382_v53  ;;  %vm5510_vm13 = vmmov %vm5498_vm5 }
 0x273   : > { %v2742_v34 = vadd.f32 %v2741_v48, %v2740_v42  ;;  %v2643_v30 = vadd.f32 %v2642_v27, %v2641_v31  ;;  %v2127_v41 = vsel %vm5496_vm15, %v2094_v50, %v1480_v44  ;;  %vm5512_vm15 = vmmov %vm5505_vm1 }
 0x274   : > { %v2160_v42 = vsel %vm2130_vm7, %v2127_v41, %v1608_v13  ;;  %v5506_v13 = vld [vmem:[#allocation56_spill] sm:$0xff] }
 0x275   : > { %v1384_v19 = vpop.permute.xlu1 %1383  ;;  %v2744_v32 = vadd.f32 %v2743_v8, %v2742_v34  ;;  %v2193_v57 = vsel %vm2163_vm9, %v2160_v42, %v1736_v5  ;;  %v2030_v27 = vsel %vm5507_vm12, %v4620_v45, %v5506_v13  ;;  %v5509_v5 = vld [vmem:[#allocation75_spill] sm:$0xff] }
 0x276   : > { %v1386_v15 = vpop.permute.xlu0 %1385  ;;  %v2095_v29 = vsel %vm5504_vm10, %v2062_v18, %v1384_v19 }
 0x279   : > { %v1832_v0 = vpop.permute.xlu1 %1831 }
 0x27a   : > { %v1834_v40 = vpop.permute.xlu0 %1833  ;;  %v2225_v35 = vsel %vm5497_vm3, %v2192_v14, %v1832_v0  ;;  %vm5513_vm3 = vmmov %vm5508_vm2 }
 0x27b   : > { %v2226_v22 = vsel %vm5499_vm14, %v2193_v57, %v1834_v40 }
 0x27d   : > { %v1482_v52 = vpop.permute.xlu1 %1481 }
 0x27e   : > { %v1484_v24 = vpop.permute.xlu0 %1483  ;;  %v2128_v4 = vsel %vm5505_vm1, %v2095_v29, %v1482_v52 }
 0x27f   : > { %v3017_v33 = vpop.f32.mrb[10].mxu0 }
 0x280   : > { %2604 = vst.msk [vmem:[%s4753_s5 + $0x58] sm:$0xff] %vm2031_vm4, %v3017_v33  ;;  %v2484_v17 = vpop.f32.mrb[11].mxu0  ;;  %v2705_v26 = vmul.f32 %v3017_v33, %v3017_v33  ;;  %v2646_v2 = vsel %vm2031_vm4, %v3017_v33, 0.0 }
 0x281   : > { %v1960_v53 = vpop.permute.xlu1 %1959  ;;  %2603 = vst.msk [vmem:[%s4753_s5 + $0x50] sm:$0xff] %vm2031_vm4, %v2484_v17  ;;  %v2644_v59 = vsel %vm2031_vm4, %v2484_v17, 0.0  ;;  %v2704_v58 = vmul.f32 %v2484_v17, %v2484_v17 }
 0x282   : > { %v2258_v62 = vsel %vm5498_vm5, %v2225_v35, %v1960_v53  ;;  %v2645_v21 = vadd.f32 %v2644_v59, %v2643_v30  ;;  %v1962_v38 = vpop.permute.xlu0 %1961  ;;  %v2747_v51 = vsel %vm2031_vm4, %v2705_v26, 0.0  ;;  %v2063_v30 = vsel %vm2031_vm4, %v2030_v27, %v5509_v5 }
 0x283   : > { %3042 = vmatprep.mubr.msk.f32.mxu1 %vm2267_vm6, %v2258_v62  ;;  %v2745_v44 = vsel %vm2031_vm4, %v2704_v58, 0.0  ;;  %v2259_v28 = vsel %vm5500_vm8, %v2226_v22, %v1962_v38  ;;  %v2096_v19 = vsel %vm5511_vm0, %v2063_v30, %v1386_v15 }
 0x284   : > { %v2746_v49 = vadd.f32 %v2745_v44, %v2744_v32  ;;  %3043 = vmatmul.mubr.msk.f32.gmra.mrb[12].mxu1 %vm2267_vm6, %v2259_v28  ;;  %v2647_v12 = vadd.f32 %v2646_v2, %v2645_v21  ;;  %v2129_v36 = vsel %vm5512_vm15, %v2096_v19, %v1484_v24 }
 0x285   : > { %v1610_v39 = vpop.permute.xlu1 %1609 }
 0x286   : > { %v1738_v60 = vpop.permute.xlu0 %1737  ;;  %v2748_v23 = vadd.f32 %v2747_v51, %v2746_v49  ;;  %v2161_v3 = vsel %vm2130_vm7, %v2128_v4, %v1610_v39 }
 0x287   : > { %v2194_v31 = vsel %vm2163_vm9, %v2161_v3, %v1738_v60 }
 0x289   : > { %v1612_v56 = vpop.permute.xlu1 %1611 }
 0x28a   : > { %v1836_v20 = vpop.permute.xlu0 %1835  ;;  %v2162_v54 = vsel %vm2130_vm7, %v2129_v36, %v1612_v56  ;;  %vm2795_vm7 = vcmask 1040384  }
 0x28b   : > { %v2227_v48 = vsel %vm5508_vm2, %v2194_v31, %v1836_v20 }
 0x28d   : > { %v1740_v25 = vpop.permute.xlu1 %1739 }
 0x28e   : > { %v1964_v34 = vpop.permute.xlu0 %1963  ;;  %v2195_v45 = vsel %vm2163_vm9, %v2162_v54, %v1740_v25 }
 0x28f   : > { %v2260_v8 = vsel %vm5510_vm13, %v2227_v48, %v1964_v34 }
 0x290   : > { %3045 = vmatprep.mubr.msk.f32.mxu1 %vm2267_vm6, %v2260_v8 }
 0x291   : > { %v1838_v32 = vpop.permute.xlu1 %1837 }
 0x292   : > { %v2228_v10 = vsel %vm5513_vm3, %v2195_v45, %v1838_v32 }
 0x295   : > { %v1966_v0 = vpop.permute.xlu1 %1965 }
 0x296   : > { %v2261_v11 = vsel %vm5498_vm5, %v2228_v10, %v1966_v0 }
 0x297   : > { %3046 = vmatmul.mubr.msk.f32.gmra.mrb[14].mxu1 %vm2267_vm6, %v2261_v11  ;;  %v3020_v6 = vpop.f32.mrb[12].mxu0 }
 0x298   : > { %2606 = vst.msk [vmem:[%s4753_s5 + $0x68] sm:$0xff] %vm2031_vm4, %v3020_v6  ;;  %v2494_v15 = vpop.f32.mrb[13].mxu0  ;;  %v2707_v37 = vmul.f32 %v3020_v6, %v3020_v6  ;;  %v2650_v61 = vsel %vm2031_vm4, %v3020_v6, 0.0 }
 0x299   : > { %2605 = vst.msk [vmem:[%s4753_s5 + $0x60] sm:$0xff] %vm2031_vm4, %v2494_v15  ;;  %v2648_v43 = vsel %vm2031_vm4, %v2494_v15, 0.0  ;;  %v2706_v7 = vmul.f32 %v2494_v15, %v2494_v15 }
 0x29a   : > { %v2649_v63 = vadd.f32 %v2648_v43, %v2647_v12  ;;  %v2751_v41 = vsel %vm2031_vm4, %v2707_v37, 0.0 }
 0x29b   : > { %v2749_v40 = vsel %vm2031_vm4, %v2706_v7, 0.0 }
 0x29c   : > { %v2750_v50 = vadd.f32 %v2749_v40, %v2748_v23  ;;  %v2651_v16 = vadd.f32 %v2650_v61, %v2649_v63 }
 0x29e   : > { %v2752_v55 = vadd.f32 %v2751_v41, %v2750_v50 }
 0x2af   : > { %v3023_v52 = vpop.f32.mrb[14].mxu0 }
 0x2b0   : > { %2608 = vst.msk [vmem:[%s4753_s5 + $0x78] sm:$0xff] %vm2031_vm4, %v3023_v52  ;;  %v2504_v42 = vpop.f32.mrb[15].mxu0  ;;  %v2709_v24 = vmul.f32 %v3023_v52, %v3023_v52  ;;  %v2654_v35 = vsel %vm2031_vm4, %v3023_v52, 0.0 }
 0x2b1   : > { %2607 = vst.msk [vmem:[%s4753_s5 + $0x70] sm:$0xff] %vm2031_vm4, %v2504_v42  ;;  %v2652_v14 = vsel %vm2031_vm4, %v2504_v42, 0.0  ;;  %v2708_v33 = vmul.f32 %v2504_v42, %v2504_v42 }
 0x2b2   : > { %v2653_v57 = vadd.f32 %v2652_v14, %v2651_v16  ;;  %v2755_v62 = vsel %vm2031_vm4, %v2709_v24, 0.0 }
 0x2b3   : > { %v2753_v53 = vsel %vm2031_vm4, %v2708_v33, 0.0 }
 0x2b4   : > { %v2655_v17 = vadd.f32 %v2654_v35, %v2653_v57  ;;  %v2754_v26 = vadd.f32 %v2753_v53, %v2752_v55 }
 0x2b6   : > { %v2756_v59 = vadd.f32 %v2755_v62, %v2754_v26 }
 0x2c7   : > { %v3026_v58 = vpop.f32.mrb[0].mxu1 }
 0x2c8   : > { %2610 = vst.msk [vmem:[%s4753_s5 + $0x88] sm:$0xff] %vm2031_vm4, %v3026_v58  ;;  %v2514_v22 = vpop.f32.mrb[1].mxu1  ;;  %v2711_v21 = vmul.f32 %v3026_v58, %v3026_v58  ;;  %v2658_v44 = vsel %vm2031_vm4, %v3026_v58, 0.0 }
 0x2c9   : > { %2609 = vst.msk [vmem:[%s4753_s5 + $0x80] sm:$0xff] %vm2031_vm4, %v2514_v22  ;;  %v2656_v38 = vsel %vm2031_vm4, %v2514_v22, 0.0  ;;  %v2710_v47 = vmul.f32 %v2514_v22, %v2514_v22 }
 0x2ca   : > { %v2657_v2 = vadd.f32 %v2656_v38, %v2655_v17  ;;  %v2759_v12 = vsel %vm2031_vm4, %v2711_v21, 0.0 }
 0x2cb   : > { %v2757_v28 = vsel %vm2031_vm4, %v2710_v47, 0.0 }
 0x2cc   : > { %v2758_v49 = vadd.f32 %v2757_v28, %v2756_v59  ;;  %v2659_v39 = vadd.f32 %v2658_v44, %v2657_v2 }
 0x2ce   : > { %v2760_v51 = vadd.f32 %v2759_v12, %v2758_v49 }
 0x2df   : > { %v3029_v1 = vpop.f32.mrb[2].mxu1 }
 0x2e0   : > { %2612 = vst.msk [vmem:[%s4753_s5 + $0x98] sm:$0xff] %vm2031_vm4, %v3029_v1  ;;  %v2524_v46 = vpop.f32.mrb[3].mxu1  ;;  %v2713_v60 = vmul.f32 %v3029_v1, %v3029_v1  ;;  %v2662_v29 = vsel %vm2031_vm4, %v3029_v1, 0.0 }
 0x2e1   : > { %2611 = vst.msk [vmem:[%s4753_s5 + $0x90] sm:$0xff] %vm2031_vm4, %v2524_v46  ;;  %v2660_v23 = vsel %vm2031_vm4, %v2524_v46, 0.0  ;;  %v2712_v9 = vmul.f32 %v2524_v46, %v2524_v46 }
 0x2e2   : > { %v2661_v18 = vadd.f32 %v2660_v23, %v2659_v39  ;;  %v2763_v20 = vsel %vm2031_vm4, %v2713_v60, 0.0 }
 0x2e3   : > { %v2761_v56 = vsel %vm2031_vm4, %v2712_v9, 0.0 }
 0x2e4   : > { %v2762_v4 = vadd.f32 %v2761_v56, %v2760_v51  ;;  %v2663_v3 = vadd.f32 %v2662_v29, %v2661_v18 }
 0x2e6   : > { %v2764_v25 = vadd.f32 %v2763_v20, %v2762_v4 }
 0x2f7   : > { %v3032_v31 = vpop.f32.mrb[4].mxu1 }
 0x2f8   : > { %2614 = vst.msk [vmem:[%s4753_s5 + $0xa8] sm:$0xff] %vm2031_vm4, %v3032_v31  ;;  %v2534_v13 = vpop.f32.mrb[5].mxu1  ;;  %v2715_v27 = vmul.f32 %v3032_v31, %v3032_v31  ;;  %v2666_v30 = vsel %vm2031_vm4, %v3032_v31, 0.0 }
 0x2f9   : > { %2613 = vst.msk [vmem:[%s4753_s5 + $0xa0] sm:$0xff] %vm2031_vm4, %v2534_v13  ;;  %v2664_v48 = vsel %vm2031_vm4, %v2534_v13, 0.0  ;;  %v2714_v34 = vmul.f32 %v2534_v13, %v2534_v13 }
 0x2fa   : > { %v2665_v5 = vadd.f32 %v2664_v48, %v2663_v3  ;;  %v2767_v36 = vsel %vm2031_vm4, %v2715_v27, 0.0 }
 0x2fb   : > { %v2765_v8 = vsel %vm2031_vm4, %v2714_v34, 0.0 }
 0x2fc   : > { %v2766_v19 = vadd.f32 %v2765_v8, %v2764_v25  ;;  %v2667_v32 = vadd.f32 %v2666_v30, %v2665_v5 }
 0x2fe   : > { %v2768_v54 = vadd.f32 %v2767_v36, %v2766_v19 }
 0x30f   : > { %v3035_v45 = vpop.f32.mrb[6].mxu1 }
 0x310   : > { %2616 = vst.msk [vmem:[%s4753_s5 + $0xb8] sm:$0xff] %vm2031_vm4, %v3035_v45  ;;  %v2544_v10 = vpop.f32.mrb[7].mxu1  ;;  %v2717_v0 = vmul.f32 %v3035_v45, %v3035_v45  ;;  %v2670_v37 = vsel %vm2031_vm4, %v3035_v45, 0.0 }
 0x311   : > { %2615 = vst.msk [vmem:[%s4753_s5 + $0xb0] sm:$0xff] %vm2031_vm4, %v2544_v10  ;;  %v2668_v11 = vsel %vm2031_vm4, %v2544_v10, 0.0  ;;  %v2716_v6 = vmul.f32 %v2544_v10, %v2544_v10 }
 0x312   : > { %v2669_v15 = vadd.f32 %v2668_v11, %v2667_v32  ;;  %v2771_v61 = vsel %vm2031_vm4, %v2717_v0, 0.0 }
 0x313   : > { %v2769_v43 = vsel %vm2031_vm4, %v2716_v6, 0.0 }
 0x314   : > { %v2770_v7 = vadd.f32 %v2769_v43, %v2768_v54  ;;  %v2671_v63 = vadd.f32 %v2670_v37, %v2669_v15 }
 0x316   : > { %v2772_v40 = vadd.f32 %v2771_v61, %v2770_v7 }
 0x327   : > { %v3038_v50 = vpop.f32.mrb[8].mxu1 }
 0x328   : > { %2618 = vst.msk [vmem:[%s4753_s5 + $0xc8] sm:$0xff] %vm2031_vm4, %v3038_v50  ;;  %v2554_v16 = vpop.f32.mrb[9].mxu1  ;;  %v2719_v41 = vmul.f32 %v3038_v50, %v3038_v50  ;;  %v2674_v24 = vsel %vm2031_vm4, %v3038_v50, 0.0 }
 0x329   : > { %2617 = vst.msk [vmem:[%s4753_s5 + $0xc0] sm:$0xff] %vm2031_vm4, %v2554_v16  ;;  %v2672_v55 = vsel %vm2031_vm4, %v2554_v16, 0.0  ;;  %v2718_v52 = vmul.f32 %v2554_v16, %v2554_v16 }
 0x32a   : > { %v2673_v42 = vadd.f32 %v2672_v55, %v2671_v63  ;;  %v2775_v35 = vsel %vm2031_vm4, %v2719_v41, 0.0 }
 0x32b   : > { %v2773_v14 = vsel %vm2031_vm4, %v2718_v52, 0.0 }
 0x32c   : > { %v2774_v33 = vadd.f32 %v2773_v14, %v2772_v40  ;;  %v2675_v57 = vadd.f32 %v2674_v24, %v2673_v42 }
 0x32e   : > { %v2776_v53 = vadd.f32 %v2775_v35, %v2774_v33 }
 0x33f   : > { %v3041_v17 = vpop.f32.mrb[10].mxu1 }
 0x340   : > { %2620 = vst.msk [vmem:[%s4753_s5 + $0xd8] sm:$0xff] %vm2031_vm4, %v3041_v17  ;;  %v2564_v26 = vpop.f32.mrb[11].mxu1  ;;  %v2721_v62 = vmul.f32 %v3041_v17, %v3041_v17  ;;  %v2678_v21 = vsel %vm2031_vm4, %v3041_v17, 0.0 }
 0x341   : > { %2619 = vst.msk [vmem:[%s4753_s5 + $0xd0] sm:$0xff] %vm2031_vm4, %v2564_v26  ;;  %v2676_v59 = vsel %vm2031_vm4, %v2564_v26, 0.0  ;;  %v2720_v58 = vmul.f32 %v2564_v26, %v2564_v26 }
 0x342   : > { %v2677_v22 = vadd.f32 %v2676_v59, %v2675_v57  ;;  %v2779_v44 = vsel %vm2031_vm4, %v2721_v62, 0.0 }
 0x343   : > { %v2777_v38 = vsel %vm2031_vm4, %v2720_v58, 0.0 }
 0x344   : > { %v2778_v47 = vadd.f32 %v2777_v38, %v2776_v53  ;;  %v2679_v2 = vadd.f32 %v2678_v21, %v2677_v22 }
 0x346   : > { %v2780_v28 = vadd.f32 %v2779_v44, %v2778_v47 }
 0x357   : > { %v3044_v49 = vpop.f32.mrb[12].mxu1 }
 0x358   : > { %2622 = vst.msk [vmem:[%s4753_s5 + $0xe8] sm:$0xff] %vm2031_vm4, %v3044_v49  ;;  %v2574_v39 = vpop.f32.mrb[13].mxu1  ;;  %v2723_v12 = vmul.f32 %v3044_v49, %v3044_v49  ;;  %v2682_v60 = vsel %vm2031_vm4, %v3044_v49, 0.0 }
 0x359   : > { %2621 = vst.msk [vmem:[%s4753_s5 + $0xe0] sm:$0xff] %vm2031_vm4, %v2574_v39  ;;  %v2680_v51 = vsel %vm2031_vm4, %v2574_v39, 0.0  ;;  %v2722_v1 = vmul.f32 %v2574_v39, %v2574_v39 }
 0x35a   : > { %v2681_v46 = vadd.f32 %v2680_v51, %v2679_v2  ;;  %v2783_v29 = vsel %vm2031_vm4, %v2723_v12, 0.0 }
 0x35b   : > { %v2781_v23 = vsel %vm2031_vm4, %v2722_v1, 0.0 }
 0x35c   : > { %v2782_v9 = vadd.f32 %v2781_v23, %v2780_v28  ;;  %v2683_v18 = vadd.f32 %v2682_v60, %v2681_v46 }
 0x35e   : > { %v2784_v56 = vadd.f32 %v2783_v29, %v2782_v9 }
 0x36a   : > { %v3047_v4 = vpop.f32.mrb[14].mxu1 }
 0x36b   : > { %2624 = vst.msk [vmem:[%s4753_s5 + $0xf8] sm:$0xff] %vm2031_vm4, %v3047_v4  ;;  %v2584_v3 = vpop.f32.mrb[15].mxu1  ;;  %v2725_v20 = vmul.f32 %v3047_v4, %v3047_v4  ;;  %v2686_v27 = vsel %vm2031_vm4, %v3047_v4, 0.0 }
 0x36c   : > { %2623 = vst.msk [vmem:[%s4753_s5 + $0xf0] sm:$0xff] %vm2031_vm4, %v2584_v3  ;;  %v2684_v25 = vsel %vm2031_vm4, %v2584_v3, 0.0  ;;  %v2724_v31 = vmul.f32 %v2584_v3, %v2584_v3 }
 0x36d   : > { %v2685_v13 = vadd.f32 %v2684_v25, %v2683_v18  ;;  %v2787_v30 = vsel %vm2031_vm4, %v2725_v20, 0.0 }
 0x36e   : > { %v2785_v48 = vsel %vm2031_vm4, %v2724_v31, 0.0  ;;  %vm2797_vm4 = vcmask 58368  }
 0x36f   : > { %v2687_v34 = vadd.f32 %v2686_v27, %v2685_v13  ;;  %v2786_v5 = vadd.f32 %v2785_v48, %v2784_v56 }
 0x371   : > { %v2688_v8 = vrot.slane %v2687_v34, 4  ;;  %v2788_v19 = vadd.f32 %v2787_v30, %v2786_v5 }
 0x373   : > { %v2689_v32 = vadd.f32 %v2688_v8, %v2687_v34  ;;  %v2789_v36 = vrot.slane %v2788_v19, 4 }
 0x375   : > { %v2690_v54 = vrot.slane %v2689_v32, 2  ;;  %v2790_v45 = vadd.f32 %v2789_v36, %v2788_v19 }
 0x377   : > { %v2691_v10 = vadd.f32 %v2690_v54, %v2689_v32  ;;  %v2791_v0 = vrot.slane %v2790_v45, 2 }
 0x379   : > { %v2692_v11 = vrot.slane %v2691_v10, 1  ;;  %v2792_v6 = vadd.f32 %v2791_v0, %v2790_v45 }
 0x37b   : > { %v2793_v15 = vrot.slane %v2792_v6, 1  ;;  %v2693_v37 = vadd.f32 %v2692_v11, %v2691_v10 }
 0x37d   : > { %v2794_v43 = vadd.f32 %v2793_v15, %v2792_v6 }
 0x37f   : > { %v2796_v7 = vsel %vm2795_vm7, %v2693_v37, %v2794_v43 }
 0x380   : > { %2798 = vst.msk [vmem:[%s171_s8] sm:$0x3] %vm2797_vm4, %v2796_v7 }
 0x381   : > { %3145 = shalt.err (!%p3142_p3)
}
 0x382   : > { %s3146_s29 = scalar_lea.hbm %s5050_s17, 32  ;;  %s3150_s28 = scalar_lea.hbm %s5095_s3, 64 }
 0x383   : > { %p3147_p4 = scmp.ne.s32.totalorder %s5050_s17, %s3146_s29  ;;  %p3151_p9 = scmp.lt.u32.totalorder %s5050_s17, %s5095_s3 }
 0x384   : > { %p3152_p10 = scmp.lt.u32.totalorder %s3150_s28, %s3146_s29  ;;  %p3154_p12 = scmp.lt.u32.totalorder %s3146_s29, %s5050_s17 }
 0x385   : > { %p3148_p7 = pnand %p3147_p4, %p3264_p5 }
 0x386   : > { %p3153_p11 = por %p3152_p10, %p3151_p9 }
 0x387   : > { %p3149_p8 = pneg %p3148_p7 }
 0x388   : > { %p3155_p13 = por %p3154_p12, %p3153_p11 }
 0x38a   : > { %p3156_p0 = pnand %p3155_p13, %p3149_p8 }
 0x38c   : > { %3159 = shalt.err (!%p3156_p0)
}
 0x38d   : > { %3062 = dma.vmem_to_hbm [thread:$0]  (%p3264_p5), %s5052_s9, 32, %s5050_s17, %s2805_s19  }
 0x38e PF: > { %p3068_p1 = scmp.ge.s32.totalorder %s3194_s15, 2  ;;  %s2841_s24 = sand.u32 1, %s3182_s12  }
 0x38f   : > { %s2842_s25 = scalar_lea.sflag [#allocation4], %s2841_s24 }
 0x390   : > { %p3065_p2 = pnand %p3068_p1, %p3268_p6 }
 0x392   : > { %3177 = dma.done.wait (!%p3065_p2), %s2842_s25, 32  }
 0x393   : > { %3179 = vsyncadd (!%p3065_p2), %s2842_s25, 4294967264  ;;  %p14_p3 = scmp.ge.s32.totalorder %s3251_s18, 4   ;;  %s5514_s12 = smov %s3186_s13 }
 0x394   : > { %s5515_s13 = smov %s3190_s14  ;;  %s5516_s14 = smov %s3262_s21 }
 0x395   : > { %s5517_s15 = smov %s3251_s18  ;;  %16 = sbr.rel (!%p14_p3) target bundleno = 3 (0x3), region = 75 }
 0x39c   :  { %2847 = vsyncpa [#allocation4], 1 }
 0x39d   :  { %2849 = vsyncpa [#allocation4 + $0x1], 1 }

</bundles_post_ra>
